<compile_context>
chip_gen: v7x
topology: tpu7x:2x2x1
jax: 0.10.0
libtpu: 0.0.40
codegen_flags: <defaults>
</compile_context>

<pallas_src>
import functools

import numpy as np
import jax
import jax.numpy as jnp
from jax.experimental import pallas as pl
from jax.experimental.pallas import tpu as pltpu


# ------------------------------ fixed geometry ------------------------------ #
H_IN = 30                       # Inputspace hard-codes 30x30 maps
K1, S1, OC1 = 5, 2, 4           # explore_conv1
H1 = (H_IN - K1) // S1 + 1      # 13
K2, OC2 = 3, 8                  # explore_conv2
H2 = H1 - K2 + 1                # 11
POS_OUT = 16
EF_OUT = 64
MID = 64
OUT_FEATURES = 32

_WEIGHT_ORDER = ("wpos", "bpos", "wb1", "b1", "wb2", "b2", "wef", "bef",
                 "w1a", "w1b", "b1h", "w2", "b2h", "wv", "bv")


# ------------------------------ Pallas kernel ------------------------------- #

def _critic_kernel(pos_ref, xg1_ref,
                   wpos_ref, bpos_ref, wb1_ref, b1_ref, wb2_ref, b2_ref,
                   wef_ref, bef_ref, w1a_ref, w1b_ref, b1h_ref,
                   w2_ref, b2h_ref, wv_ref, bv_ref,
                   out_ref, *, b_tile, compute_dtype):
    Bt = b_tile
    cdt = compute_dtype
    f32 = jnp.float32

    # ---- position branch: (Bt, 2T) @ block-diag (2T, 16T), one MXU push ----
    plin = jnp.dot(pos_ref[...], wpos_ref[...], preferred_element_type=f32)
    plin = jnp.maximum(plin + bpos_ref[...], 0.0)                 # (Bt, 16T)

    # ---- explore_conv1: rows-only im2col slab x stacked banded weight ----
    # xg1 rows = (y, b), cols = (tap i, chan c, width w); one K=600 matmul.
    a1 = jnp.dot(xg1_ref[...], wb1_ref[...], preferred_element_type=f32)
    h1 = jnp.maximum(a1 + b1_ref[...], 0.0)          # (13*Bt, 52) rows (y,b), cols (oc,x)

    # ---- explore_conv2: 3 contiguous static row-shift slices, lane-concat,
    #      one K=156 matmul (no selection gather, y-major rows preserved) ----
    xg2 = jnp.concatenate([h1[i * Bt:(i + H2) * Bt, :] for i in range(K2)], axis=1)
    a2 = jnp.dot(xg2.astype(cdt), wb2_ref[...], preferred_element_type=f32)
    h2 = jnp.maximum(a2 + b2_ref[...], 0.0)          # (11*Bt, 88) rows (y,b), cols (oc,x)

    # ---- explore_flat1: repack to lane-dense (Bt, 968), one K=968 matmul ----
    h2r = jnp.concatenate([h2[y * Bt:(y + 1) * Bt, :] for y in range(H2)], axis=1)
    ef = jnp.dot(h2r.astype(cdt), wef_ref[...], preferred_element_type=f32)
    ef = jnp.maximum(ef + bef_ref[...], 0.0)                      # (Bt, 64)

    # ---- head: input_dense1 split along torch.cat([pos, explore], dim=1) ----
    h3 = (jnp.dot(plin.astype(cdt), w1a_ref[...], preferred_element_type=f32)
          + jnp.dot(ef.astype(cdt), w1b_ref[...], preferred_element_type=f32))
    h3 = jnp.maximum(h3 + b1h_ref[...], 0.0)                      # (Bt, 64)
    h4 = jnp.dot(h3.astype(cdt), w2_ref[...], preferred_element_type=f32)
    h4 = jnp.maximum(h4 + b2h_ref[...], 0.0)                      # (Bt, 32)
    v = jnp.dot(h4.astype(cdt), wv_ref[...], preferred_element_type=f32) + bv_ref[...]
    out_ref[...] = v.astype(out_ref.dtype)                        # (Bt, 1)


# ------------------- one-time host-side weight preparation ------------------ #

def init_params(key, time_steps):
    """Synthetic parameters stored in PyTorch layouts (Linear: (out,in), Conv: OIHW)."""
    T = time_steps
    ks = jax.random.split(key, 14)

    def w(k, shape, fan_in):
        return jax.random.normal(k, shape, dtype=jnp.float32) / np.sqrt(fan_in)

    def b(k, shape):
        return 0.1 * jax.random.normal(k, shape, dtype=jnp.float32)

    features_explore = OC2 * H2 * H2                 # 968 (= get_in_features_2d * 8)
    input_features = POS_OUT * T + EF_OUT
    return {
        "pos_w": w(ks[0], (POS_OUT, 2), 2),                       "pos_b": b(ks[1], (POS_OUT,)),
        "c1_w": w(ks[2], (OC1, T, K1, K1), T * K1 * K1),          "c1_b": b(ks[3], (OC1,)),
        "c2_w": w(ks[4], (OC2, OC1, K2, K2), OC1 * K2 * K2),      "c2_b": b(ks[5], (OC2,)),
        "ef_w": w(ks[6], (EF_OUT, features_explore), features_explore), "ef_b": b(ks[7], (EF_OUT,)),
        "d1_w": w(ks[8], (MID, input_features), input_features),  "d1_b": b(ks[9], (MID,)),
        "d2_w": w(ks[10], (OUT_FEATURES, MID), MID),              "d2_b": b(ks[11], (OUT_FEATURES,)),
        "v_w": w(ks[12], (1, OUT_FEATURES), OUT_FEATURES),        "v_b": b(ks[13], (1,)),
    }


def prepare_weights(params, time_steps, compute_dtype=jnp.float32):
    """One-time conversion of PyTorch-layout weights into matmul-ready operands."""
    T = time_steps
    g = lambda name: np.asarray(params[name], dtype=np.float32)
    pos_w, pos_b = g("pos_w"), g("pos_b")
    c1_w, c1_b = g("c1_w"), g("c1_b")
    c2_w, c2_b = g("c2_w"), g("c2_b")
    ef_w, ef_b = g("ef_w"), g("ef_b")
    d1_w, d1_b = g("d1_w"), g("d1_b")
    d2_w, d2_b = g("d2_w"), g("d2_b")
    v_w, v_b = g("v_w"), g("v_b")

    # Position Linear as one block-diagonal matmul on (B, 2T); columns (t, f)
    # match PyTorch's flatten order of the (B, T, 16) activation.
    wpos = np.zeros((2 * T, POS_OUT * T), np.float32)
    for t in range(T):
        wpos[2 * t:2 * t + 2, POS_OUT * t:POS_OUT * (t + 1)] = pos_w.T
    bpos = np.tile(pos_b, T)[None, :]                              # (1, 16T)

    # conv1 stacked banded weight: rows (i, c, w), cols (oc, ox);
    # wb1[i*T*30 + c*30 + (2*ox+j), oc*13 + ox] = c1_w[oc, c, i, j].
    wb1 = np.zeros((K1, T, H_IN, OC1, H1), np.float32)
    ker1 = np.transpose(c1_w, (2, 1, 3, 0))                        # (i, c, j, oc)
    for ox in range(H1):
        wb1[:, :, 2 * ox:2 * ox + K1, :, ox] = ker1
    wb1 = wb1.reshape(K1 * T * H_IN, OC1 * H1)                     # (600, 52)
    b1 = np.repeat(c1_b, H1)[None, :]                              # (1, 52)

    # conv2 stacked banded weight: rows (i2, c1, w1), cols (oc2, ox2);
    # wb2[i2*52 + c1*13 + (ox+j2), oc2*11 + ox] = c2_w[oc2, c1, i2, j2].
    wb2 = np.zeros((K2, OC1, H1, OC2, H2), np.float32)
    ker2 = np.transpose(c2_w, (2, 1, 3, 0))                        # (i2, c1, j2, oc2)
    for ox in range(H2):
        wb2[:, :, ox:ox + K2, :, ox] = ker2
    wb2 = wb2.reshape(K2 * OC1 * H1, OC2 * H2)                     # (156, 88)
    b2 = np.repeat(c2_b, H2)[None, :]                              # (1, 88)

    # explore_flat1: permute rows of ef_w^T from PyTorch (oc, y, x) flatten
    # order to the kernel's (y, oc, x) repack order.
    wef = (ef_w.T.reshape(OC2, H2, H2, EF_OUT)
           .transpose(1, 0, 2, 3).reshape(H2 * OC2 * H2, EF_OUT))  # (968, 64)
    bef = ef_b[None, :]

    # input_dense1 split along torch.cat([pos, explore], dim=1).
    d1t = d1_w.T                                                   # (16T + 64, 64)
    w1a = np.ascontiguousarray(d1t[: POS_OUT * T])                 # (16T, 64)
    w1b = np.ascontiguousarray(d1t[POS_OUT * T:])                  # (64, 64)

    mm = dict(wpos=wpos, wb1=wb1, wb2=wb2, wef=wef, w1a=w1a, w1b=w1b,
              w2=d2_w.T, wv=v_w.T)
    bias = dict(bpos=bpos, b1=b1, b2=b2, bef=bef, b1h=d1_b[None, :],
                b2h=d2_b[None, :], bv=v_b[None, :])
    prep = {k: jnp.asarray(v, dtype=compute_dtype) for k, v in mm.items()}
    prep.update({k: jnp.asarray(v, dtype=jnp.float32) for k, v in bias.items()})
    return prep


# --------------------------------- wrapper ---------------------------------- #

def make_critic_forward(params, time_steps, *, use_bf16=False, b_tile_max=128):
    T = time_steps
    cdt = jnp.bfloat16 if use_bf16 else jnp.float32
    prep = prepare_weights(params, T, compute_dtype=cdt)
    weight_bytes = int(sum(int(v.size) * v.dtype.itemsize for v in prep.values()))

    @jax.jit
    def forward(exploration_map, position):
        B = position.shape[0]
        Bt = B if B <= b_tile_max else b_tile_max       # b_tile_max % 8 == 0
        num_tiles = (B + Bt - 1) // Bt
        B_pad = num_tiles * Bt

        x, p = exploration_map, position
        if B_pad != B:
            x = jnp.pad(x, ((0, B_pad - B), (0, 0), (0, 0), (0, 0)))
            p = jnp.pad(p, ((0, B_pad - B), (0, 0), (0, 0)))

        # Positions as (B_pad, 2T) — a plain reshape, columns ordered (t, k).
        pos2 = p.reshape(B_pad, 2 * T).astype(cdt)

        # Rows-only im2col for conv1 (cheap XLA gather, done once per call):
        # per tile, rows = (y, b_local), cols = (tap i, chan c, width w),
        # with map row 2*y + i.  The 5 taps arrive lane-concatenated so the
        # kernel does a single K=600 matmul.
        row_idx = 2 * np.arange(H1)[:, None] + np.arange(K1)[None, :]   # (13, 5)
        xg = x[:, :, row_idx, :]                        # (B_pad, T, 13, 5, 30)
        xg = xg.transpose(2, 0, 3, 1, 4)                # (13, B_pad, 5, T, 30)
        xg = xg.reshape(H1, num_tiles, Bt, K1 * T * H_IN)
        xg = xg.transpose(1, 0, 2, 3).reshape(num_tiles * H1 * Bt, K1 * T * H_IN)
        xg1 = xg.astype(cdt)

        flops_per_sample = 2 * (H1 * (K1 * T * H_IN) * (OC1 * H1)
                                + H2 * (K2 * OC1 * H1) * (OC2 * H2)
                                + (H2 * OC2 * H2) * EF_OUT
                                + (2 * T) * (POS_OUT * T)
                                + (POS_OUT * T + EF_OUT) * MID
                                + MID * OUT_FEATURES + OUT_FEATURES)
        cost = pl.CostEstimate(
            flops=flops_per_sample * B_pad,
            transcendentals=0,
            bytes_accessed=int(weight_bytes
                               + int(xg1.size) * xg1.dtype.itemsize
                               + int(pos2.size) * pos2.dtype.itemsize
                               + B_pad * 4))

        kernel = functools.partial(_critic_kernel, b_tile=Bt, compute_dtype=cdt)

        in_specs = [
            pl.BlockSpec((Bt, 2 * T), lambda t: (t, 0)),
            pl.BlockSpec((H1 * Bt, K1 * T * H_IN), lambda t: (t, 0)),
        ]
        # Weights: full-array blocks with a constant index_map -> DMA'd once,
        # VMEM-resident across all batch-tile grid steps.
        in_specs += [pl.BlockSpec(prep[k].shape, lambda t: (0, 0))
                     for k in _WEIGHT_ORDER]

        out = pl.pallas_call(
            kernel,
            grid=(num_tiles,),
            in_specs=in_specs,
            out_specs=pl.BlockSpec((Bt, 1), lambda t: (t, 0)),
            out_shape=jax.ShapeDtypeStruct((B_pad, 1), jnp.float32),
            compiler_params=pltpu.CompilerParams(
                dimension_semantics=("parallel",),
                vmem_limit_bytes=32 * 1024 * 1024),
            cost_estimate=cost,
        )(pos2, xg1, *[prep[k] for k in _WEIGHT_ORDER])
        return out[:B]

    return forward


# --------------------------- pure-JAX reference ----------------------------- #

def critic_reference(params, exploration_map, position):
    hp = jax.lax.Precision.HIGHEST
    B = position.shape[0]
    pos = jnp.maximum(jnp.einsum("btk,nk->btn", position, params["pos_w"],
                                 precision=hp) + params["pos_b"], 0.0)
    pos = pos.reshape(B, -1)
    e = jax.lax.conv_general_dilated(exploration_map, params["c1_w"], (2, 2), "VALID",
                                     dimension_numbers=("NCHW", "OIHW", "NCHW"),
                                     precision=hp)
    e = jnp.maximum(e + params["c1_b"][None, :, None, None], 0.0)
    e = jax.lax.conv_general_dilated(e, params["c2_w"], (1, 1), "VALID",
                                     dimension_numbers=("NCHW", "OIHW", "NCHW"),
                                     precision=hp)
    e = jnp.maximum(e + params["c2_b"][None, :, None, None], 0.0)
    e = e.reshape(B, -1)
    e = jnp.maximum(jnp.dot(e, params["ef_w"].T, precision=hp) + params["ef_b"], 0.0)
    x = jnp.concatenate([pos, e], axis=1)
    x = jnp.maximum(jnp.dot(x, params["d1_w"].T, precision=hp) + params["d1_b"], 0.0)
    x = jnp.maximum(jnp.dot(x, params["d2_w"].T, precision=hp) + params["d2_b"], 0.0)
    return jnp.dot(x, params["v_w"].T, precision=hp) + params["v_b"]


# ----------------------------------- main ------------------------------------ #

if __name__ == "__main__":
    B, T = 2, 4
    key = jax.random.PRNGKey(0)
    k1, k2, k3 = jax.random.split(key, 3)
    exploration_map = jax.random.normal(k1, (B, T, H_IN, H_IN), dtype=jnp.float32)
    position = jax.random.normal(k2, (B, T, 2), dtype=jnp.float32)
    params = init_params(k3, T)

    expected = np.asarray(critic_reference(params, exploration_map, position))

    # f32 path (strict check).
    forward = make_critic_forward(params, T, use_bf16=False)
    value = jax.block_until_ready(forward(exploration_map, position))
    assert value.shape == (B, 1) and value.dtype == jnp.float32
    np.testing.assert_allclose(np.asarray(value), expected, rtol=2e-2, atol=2e-2)

    # bf16-MXU-operand path (v6e/v7x throughput variant); f32 accumulation,
    # lower-precision inputs -> proportionally looser tolerance.
    forward_bf16 = make_critic_forward(params, T, use_bf16=True)
    value_bf16 = jax.block_until_ready(forward_bf16(exploration_map, position))
    np.testing.assert_allclose(np.asarray(value_bf16), expected, rtol=1e-1, atol=1e-1)

    print("KERNEL_OK")
</pallas_src>

<mosaic_0001>
module attributes {stable_mosaic.version = 11 : i64} {
  func.func @_critic_kernel(%arg0: i32, %arg1: memref<2x8xf32, #tpu.memory_space<vmem>>, %arg2: memref<26x600xf32, #tpu.memory_space<vmem>>, %arg3: memref<8x64xf32, #tpu.memory_space<vmem>>, %arg4: memref<1x64xf32, #tpu.memory_space<vmem>>, %arg5: memref<600x52xf32, #tpu.memory_space<vmem>>, %arg6: memref<1x52xf32, #tpu.memory_space<vmem>>, %arg7: memref<156x88xf32, #tpu.memory_space<vmem>>, %arg8: memref<1x88xf32, #tpu.memory_space<vmem>>, %arg9: memref<968x64xf32, #tpu.memory_space<vmem>>, %arg10: memref<1x64xf32, #tpu.memory_space<vmem>>, %arg11: memref<64x64xf32, #tpu.memory_space<vmem>>, %arg12: memref<64x64xf32, #tpu.memory_space<vmem>>, %arg13: memref<1x64xf32, #tpu.memory_space<vmem>>, %arg14: memref<64x32xf32, #tpu.memory_space<vmem>>, %arg15: memref<1x32xf32, #tpu.memory_space<vmem>>, %arg16: memref<32x1xf32, #tpu.memory_space<vmem>>, %arg17: memref<1x1xf32, #tpu.memory_space<vmem>>, %arg18: memref<2x1xf32, #tpu.memory_space<vmem>>) attributes {dimension_semantics = [#tpu.dimension_semantics<parallel>], iteration_bounds = array<i64: 1>, scalar_prefetch = 0 : i64, scratch_operands = 0 : i64, tpu.core_type = #tpu.core_type<tc>, window_params = [{transform_indices = @transform_0, window_bounds = array<i64: 2, 8>}, {transform_indices = @transform_1, window_bounds = array<i64: 26, 600>}, {pipeline_mode = #tpu.pipeline_mode<synchronous>, transform_indices = @transform_2, window_bounds = array<i64: 8, 64>}, {pipeline_mode = #tpu.pipeline_mode<synchronous>, transform_indices = @transform_3, window_bounds = array<i64: 1, 64>}, {pipeline_mode = #tpu.pipeline_mode<synchronous>, transform_indices = @transform_4, window_bounds = array<i64: 600, 52>}, {pipeline_mode = #tpu.pipeline_mode<synchronous>, transform_indices = @transform_5, window_bounds = array<i64: 1, 52>}, {pipeline_mode = #tpu.pipeline_mode<synchronous>, transform_indices = @transform_6, window_bounds = array<i64: 156, 88>}, {pipeline_mode = #tpu.pipeline_mode<synchronous>, transform_indices = @transform_7, window_bounds = array<i64: 1, 88>}, {pipeline_mode = #tpu.pipeline_mode<synchronous>, transform_indices = @transform_8, window_bounds = array<i64: 968, 64>}, {pipeline_mode = #tpu.pipeline_mode<synchronous>, transform_indices = @transform_9, window_bounds = array<i64: 1, 64>}, {pipeline_mode = #tpu.pipeline_mode<synchronous>, transform_indices = @transform_10, window_bounds = array<i64: 64, 64>}, {pipeline_mode = #tpu.pipeline_mode<synchronous>, transform_indices = @transform_11, window_bounds = array<i64: 64, 64>}, {pipeline_mode = #tpu.pipeline_mode<synchronous>, transform_indices = @transform_12, window_bounds = array<i64: 1, 64>}, {pipeline_mode = #tpu.pipeline_mode<synchronous>, transform_indices = @transform_13, window_bounds = array<i64: 64, 32>}, {pipeline_mode = #tpu.pipeline_mode<synchronous>, transform_indices = @transform_14, window_bounds = array<i64: 1, 32>}, {pipeline_mode = #tpu.pipeline_mode<synchronous>, transform_indices = @transform_15, window_bounds = array<i64: 32, 1>}, {pipeline_mode = #tpu.pipeline_mode<synchronous>, transform_indices = @transform_16, window_bounds = array<i64: 1, 1>}, {transform_indices = @transform_17, window_bounds = array<i64: 2, 1>}]} {
    %c0 = arith.constant 0 : index
    %c0_0 = arith.constant 0 : index
    %0 = vector.load %arg1[%c0, %c0_0] : memref<2x8xf32, #tpu.memory_space<vmem>>, vector<2x8xf32>
    %c0_1 = arith.constant 0 : index
    %c0_2 = arith.constant 0 : index
    %1 = vector.load %arg3[%c0_1, %c0_2] : memref<8x64xf32, #tpu.memory_space<vmem>>, vector<8x64xf32>
    %cst = arith.constant dense<0.000000e+00> : vector<2x64xf32>
    %2 = tpu.matmul %0, %1, %cst {dimension_numbers = #tpu.dot_dimension_numbers<[1], [0], [0], [1], [0, 0, 1, 1], [], []>} : vector<2x8xf32>, vector<8x64xf32>, vector<2x64xf32> -> vector<2x64xf32>
    %c0_3 = arith.constant 0 : index
    %c0_4 = arith.constant 0 : index
    %3 = vector.load %arg4[%c0_3, %c0_4] : memref<1x64xf32, #tpu.memory_space<vmem>>, vector<1x64xf32>
    %4 = vector.broadcast %3 : vector<1x64xf32> to vector<2x64xf32>
    %5 = arith.addf %2, %4 : vector<2x64xf32>
    %cst_5 = arith.constant 0.000000e+00 : f32
    %6 = vector.broadcast %cst_5 : f32 to vector<2x64xf32>
    %7 = arith.maximumf %5, %6 : vector<2x64xf32>
    %c0_6 = arith.constant 0 : index
    %c0_7 = arith.constant 0 : index
    %8 = vector.load %arg2[%c0_6, %c0_7] : memref<26x600xf32, #tpu.memory_space<vmem>>, vector<26x600xf32>
    %c0_8 = arith.constant 0 : index
    %c0_9 = arith.constant 0 : index
    %9 = vector.load %arg5[%c0_8, %c0_9] : memref<600x52xf32, #tpu.memory_space<vmem>>, vector<600x52xf32>
    %cst_10 = arith.constant dense<0.000000e+00> : vector<26x52xf32>
    %10 = tpu.matmul %8, %9, %cst_10 {dimension_numbers = #tpu.dot_dimension_numbers<[1], [0], [0], [1], [0, 0, 1, 1], [], []>} : vector<26x600xf32>, vector<600x52xf32>, vector<26x52xf32> -> vector<26x52xf32>
    %c0_11 = arith.constant 0 : index
    %c0_12 = arith.constant 0 : index
    %11 = vector.load %arg6[%c0_11, %c0_12] : memref<1x52xf32, #tpu.memory_space<vmem>>, vector<1x52xf32>
    %12 = vector.broadcast %11 : vector<1x52xf32> to vector<26x52xf32>
    %13 = arith.addf %10, %12 : vector<26x52xf32>
    %cst_13 = arith.constant 0.000000e+00 : f32
    %14 = vector.broadcast %cst_13 : f32 to vector<26x52xf32>
    %15 = arith.maximumf %13, %14 : vector<26x52xf32>
    %16 = vector.extract_strided_slice %15 {offsets = [0, 0], sizes = [22, 52], strides = [1, 1]} : vector<26x52xf32> to vector<22x52xf32>
    %17 = vector.extract_strided_slice %15 {offsets = [2, 0], sizes = [22, 52], strides = [1, 1]} : vector<26x52xf32> to vector<22x52xf32>
    %18 = vector.extract_strided_slice %15 {offsets = [4, 0], sizes = [22, 52], strides = [1, 1]} : vector<26x52xf32> to vector<22x52xf32>
    %19 = tpu.concatenate %16, %17, %18 in 1 : vector<22x52xf32>, vector<22x52xf32>, vector<22x52xf32> -> vector<22x156xf32>
    %c0_14 = arith.constant 0 : index
    %c0_15 = arith.constant 0 : index
    %20 = vector.load %arg7[%c0_14, %c0_15] : memref<156x88xf32, #tpu.memory_space<vmem>>, vector<156x88xf32>
    %cst_16 = arith.constant dense<0.000000e+00> : vector<22x88xf32>
    %21 = tpu.matmul %19, %20, %cst_16 {dimension_numbers = #tpu.dot_dimension_numbers<[1], [0], [0], [1], [0, 0, 1, 1], [], []>} : vector<22x156xf32>, vector<156x88xf32>, vector<22x88xf32> -> vector<22x88xf32>
    %c0_17 = arith.constant 0 : index
    %c0_18 = arith.constant 0 : index
    %22 = vector.load %arg8[%c0_17, %c0_18] : memref<1x88xf32, #tpu.memory_space<vmem>>, vector<1x88xf32>
    %23 = vector.broadcast %22 : vector<1x88xf32> to vector<22x88xf32>
    %24 = arith.addf %21, %23 : vector<22x88xf32>
    %cst_19 = arith.constant 0.000000e+00 : f32
    %25 = vector.broadcast %cst_19 : f32 to vector<22x88xf32>
    %26 = arith.maximumf %24, %25 : vector<22x88xf32>
    %27 = vector.extract_strided_slice %26 {offsets = [0, 0], sizes = [2, 88], strides = [1, 1]} : vector<22x88xf32> to vector<2x88xf32>
    %28 = vector.extract_strided_slice %26 {offsets = [2, 0], sizes = [2, 88], strides = [1, 1]} : vector<22x88xf32> to vector<2x88xf32>
    %29 = vector.extract_strided_slice %26 {offsets = [4, 0], sizes = [2, 88], strides = [1, 1]} : vector<22x88xf32> to vector<2x88xf32>
    %30 = vector.extract_strided_slice %26 {offsets = [6, 0], sizes = [2, 88], strides = [1, 1]} : vector<22x88xf32> to vector<2x88xf32>
    %31 = vector.extract_strided_slice %26 {offsets = [8, 0], sizes = [2, 88], strides = [1, 1]} : vector<22x88xf32> to vector<2x88xf32>
    %32 = vector.extract_strided_slice %26 {offsets = [10, 0], sizes = [2, 88], strides = [1, 1]} : vector<22x88xf32> to vector<2x88xf32>
    %33 = vector.extract_strided_slice %26 {offsets = [12, 0], sizes = [2, 88], strides = [1, 1]} : vector<22x88xf32> to vector<2x88xf32>
    %34 = vector.extract_strided_slice %26 {offsets = [14, 0], sizes = [2, 88], strides = [1, 1]} : vector<22x88xf32> to vector<2x88xf32>
    %35 = vector.extract_strided_slice %26 {offsets = [16, 0], sizes = [2, 88], strides = [1, 1]} : vector<22x88xf32> to vector<2x88xf32>
    %36 = vector.extract_strided_slice %26 {offsets = [18, 0], sizes = [2, 88], strides = [1, 1]} : vector<22x88xf32> to vector<2x88xf32>
    %37 = vector.extract_strided_slice %26 {offsets = [20, 0], sizes = [2, 88], strides = [1, 1]} : vector<22x88xf32> to vector<2x88xf32>
    %38 = tpu.concatenate %27, %28, %29, %30, %31, %32, %33, %34, %35, %36, %37 in 1 : vector<2x88xf32>, vector<2x88xf32>, vector<2x88xf32>, vector<2x88xf32>, vector<2x88xf32>, vector<2x88xf32>, vector<2x88xf32>, vector<2x88xf32>, vector<2x88xf32>, vector<2x88xf32>, vector<2x88xf32> -> vector<2x968xf32>
    %c0_20 = arith.constant 0 : index
    %c0_21 = arith.constant 0 : index
    %39 = vector.load %arg9[%c0_20, %c0_21] : memref<968x64xf32, #tpu.memory_space<vmem>>, vector<968x64xf32>
    %cst_22 = arith.constant dense<0.000000e+00> : vector<2x64xf32>
    %40 = tpu.matmul %38, %39, %cst_22 {dimension_numbers = #tpu.dot_dimension_numbers<[1], [0], [0], [1], [0, 0, 1, 1], [], []>} : vector<2x968xf32>, vector<968x64xf32>, vector<2x64xf32> -> vector<2x64xf32>
    %c0_23 = arith.constant 0 : index
    %c0_24 = arith.constant 0 : index
    %41 = vector.load %arg10[%c0_23, %c0_24] : memref<1x64xf32, #tpu.memory_space<vmem>>, vector<1x64xf32>
    %42 = vector.broadcast %41 : vector<1x64xf32> to vector<2x64xf32>
    %43 = arith.addf %40, %42 : vector<2x64xf32>
    %cst_25 = arith.constant 0.000000e+00 : f32
    %44 = vector.broadcast %cst_25 : f32 to vector<2x64xf32>
    %45 = arith.maximumf %43, %44 : vector<2x64xf32>
    %c0_26 = arith.constant 0 : index
    %c0_27 = arith.constant 0 : index
    %46 = vector.load %arg11[%c0_26, %c0_27] : memref<64x64xf32, #tpu.memory_space<vmem>>, vector<64x64xf32>
    %cst_28 = arith.constant dense<0.000000e+00> : vector<2x64xf32>
    %47 = tpu.matmul %7, %46, %cst_28 {dimension_numbers = #tpu.dot_dimension_numbers<[1], [0], [0], [1], [0, 0, 1, 1], [], []>} : vector<2x64xf32>, vector<64x64xf32>, vector<2x64xf32> -> vector<2x64xf32>
    %c0_29 = arith.constant 0 : index
    %c0_30 = arith.constant 0 : index
    %48 = vector.load %arg12[%c0_29, %c0_30] : memref<64x64xf32, #tpu.memory_space<vmem>>, vector<64x64xf32>
    %cst_31 = arith.constant dense<0.000000e+00> : vector<2x64xf32>
    %49 = tpu.matmul %45, %48, %cst_31 {dimension_numbers = #tpu.dot_dimension_numbers<[1], [0], [0], [1], [0, 0, 1, 1], [], []>} : vector<2x64xf32>, vector<64x64xf32>, vector<2x64xf32> -> vector<2x64xf32>
    %50 = arith.addf %47, %49 : vector<2x64xf32>
    %c0_32 = arith.constant 0 : index
    %c0_33 = arith.constant 0 : index
    %51 = vector.load %arg13[%c0_32, %c0_33] : memref<1x64xf32, #tpu.memory_space<vmem>>, vector<1x64xf32>
    %52 = vector.broadcast %51 : vector<1x64xf32> to vector<2x64xf32>
    %53 = arith.addf %50, %52 : vector<2x64xf32>
    %cst_34 = arith.constant 0.000000e+00 : f32
    %54 = vector.broadcast %cst_34 : f32 to vector<2x64xf32>
    %55 = arith.maximumf %53, %54 : vector<2x64xf32>
    %c0_35 = arith.constant 0 : index
    %c0_36 = arith.constant 0 : index
    %56 = vector.load %arg14[%c0_35, %c0_36] : memref<64x32xf32, #tpu.memory_space<vmem>>, vector<64x32xf32>
    %cst_37 = arith.constant dense<0.000000e+00> : vector<2x32xf32>
    %57 = tpu.matmul %55, %56, %cst_37 {dimension_numbers = #tpu.dot_dimension_numbers<[1], [0], [0], [1], [0, 0, 1, 1], [], []>} : vector<2x64xf32>, vector<64x32xf32>, vector<2x32xf32> -> vector<2x32xf32>
    %c0_38 = arith.constant 0 : index
    %c0_39 = arith.constant 0 : index
    %58 = vector.load %arg15[%c0_38, %c0_39] : memref<1x32xf32, #tpu.memory_space<vmem>>, vector<1x32xf32>
    %59 = vector.broadcast %58 : vector<1x32xf32> to vector<2x32xf32>
    %60 = arith.addf %57, %59 : vector<2x32xf32>
    %cst_40 = arith.constant 0.000000e+00 : f32
    %61 = vector.broadcast %cst_40 : f32 to vector<2x32xf32>
    %62 = arith.maximumf %60, %61 : vector<2x32xf32>
    %c0_41 = arith.constant 0 : index
    %c0_42 = arith.constant 0 : index
    %63 = vector.load %arg16[%c0_41, %c0_42] : memref<32x1xf32, #tpu.memory_space<vmem>>, vector<32x1xf32>
    %cst_43 = arith.constant dense<0.000000e+00> : vector<2x1xf32>
    %64 = tpu.matmul %62, %63, %cst_43 {dimension_numbers = #tpu.dot_dimension_numbers<[1], [0], [0], [1], [0, 0, 1, 1], [], []>} : vector<2x32xf32>, vector<32x1xf32>, vector<2x1xf32> -> vector<2x1xf32>
    %c0_44 = arith.constant 0 : index
    %c0_45 = arith.constant 0 : index
    %65 = vector.load %arg17[%c0_44, %c0_45] : memref<1x1xf32, #tpu.memory_space<vmem>>, vector<1x1xf32>
    %66 = vector.broadcast %65 : vector<1x1xf32> to vector<2x1xf32>
    %67 = arith.addf %64, %66 : vector<2x1xf32>
    %c0_46 = arith.constant 0 : index
    %c0_47 = arith.constant 0 : index
    %68 = vector.load %arg18[%c0_46, %c0_47] : memref<2x1xf32, #tpu.memory_space<vmem>>, vector<2x1xf32>
    tpu.vector_store %arg18[%c0_46, %c0_47], %67 {strides = array<i32>} : memref<2x1xf32, #tpu.memory_space<vmem>>, vector<2x1xf32>,
    return
  }
  func.func @transform_0(%arg0: i32) -> (i32, i32) {
    %c0_i32 = arith.constant 0 : i32
    %c0_i32_0 = arith.constant 0 : i32
    return %arg0, %c0_i32 : i32, i32
  }
  func.func @transform_1(%arg0: i32) -> (i32, i32) {
    %c0_i32 = arith.constant 0 : i32
    %c0_i32_0 = arith.constant 0 : i32
    return %arg0, %c0_i32 : i32, i32
  }
  func.func @transform_2(%arg0: i32) -> (i32, i32) {
    %c0_i32 = arith.constant 0 : i32
    %c0_i32_0 = arith.constant 0 : i32
    %c0_i32_1 = arith.constant 0 : i32
    return %c0_i32, %c0_i32_0 : i32, i32
  }
  func.func @transform_3(%arg0: i32) -> (i32, i32) {
    %c0_i32 = arith.constant 0 : i32
    %c0_i32_0 = arith.constant 0 : i32
    %c0_i32_1 = arith.constant 0 : i32
    return %c0_i32, %c0_i32_0 : i32, i32
  }
  func.func @transform_4(%arg0: i32) -> (i32, i32) {
    %c0_i32 = arith.constant 0 : i32
    %c0_i32_0 = arith.constant 0 : i32
    %c0_i32_1 = arith.constant 0 : i32
    return %c0_i32, %c0_i32_0 : i32, i32
  }
  func.func @transform_5(%arg0: i32) -> (i32, i32) {
    %c0_i32 = arith.constant 0 : i32
    %c0_i32_0 = arith.constant 0 : i32
    %c0_i32_1 = arith.constant 0 : i32
    return %c0_i32, %c0_i32_0 : i32, i32
  }
  func.func @transform_6(%arg0: i32) -> (i32, i32) {
    %c0_i32 = arith.constant 0 : i32
    %c0_i32_0 = arith.constant 0 : i32
    %c0_i32_1 = arith.constant 0 : i32
    return %c0_i32, %c0_i32_0 : i32, i32
  }
  func.func @transform_7(%arg0: i32) -> (i32, i32) {
    %c0_i32 = arith.constant 0 : i32
    %c0_i32_0 = arith.constant 0 : i32
    %c0_i32_1 = arith.constant 0 : i32
    return %c0_i32, %c0_i32_0 : i32, i32
  }
  func.func @transform_8(%arg0: i32) -> (i32, i32) {
    %c0_i32 = arith.constant 0 : i32
    %c0_i32_0 = arith.constant 0 : i32
    %c0_i32_1 = arith.constant 0 : i32
    return %c0_i32, %c0_i32_0 : i32, i32
  }
  func.func @transform_9(%arg0: i32) -> (i32, i32) {
    %c0_i32 = arith.constant 0 : i32
    %c0_i32_0 = arith.constant 0 : i32
    %c0_i32_1 = arith.constant 0 : i32
    return %c0_i32, %c0_i32_0 : i32, i32
  }
  func.func @transform_10(%arg0: i32) -> (i32, i32) {
    %c0_i32 = arith.constant 0 : i32
    %c0_i32_0 = arith.constant 0 : i32
    %c0_i32_1 = arith.constant 0 : i32
    return %c0_i32, %c0_i32_0 : i32, i32
  }
  func.func @transform_11(%arg0: i32) -> (i32, i32) {
    %c0_i32 = arith.constant 0 : i32
    %c0_i32_0 = arith.constant 0 : i32
    %c0_i32_1 = arith.constant 0 : i32
    return %c0_i32, %c0_i32_0 : i32, i32
  }
  func.func @transform_12(%arg0: i32) -> (i32, i32) {
    %c0_i32 = arith.constant 0 : i32
    %c0_i32_0 = arith.constant 0 : i32
    %c0_i32_1 = arith.constant 0 : i32
    return %c0_i32, %c0_i32_0 : i32, i32
  }
  func.func @transform_13(%arg0: i32) -> (i32, i32) {
    %c0_i32 = arith.constant 0 : i32
    %c0_i32_0 = arith.constant 0 : i32
    %c0_i32_1 = arith.constant 0 : i32
    return %c0_i32, %c0_i32_0 : i32, i32
  }
  func.func @transform_14(%arg0: i32) -> (i32, i32) {
    %c0_i32 = arith.constant 0 : i32
    %c0_i32_0 = arith.constant 0 : i32
    %c0_i32_1 = arith.constant 0 : i32
    return %c0_i32, %c0_i32_0 : i32, i32
  }
  func.func @transform_15(%arg0: i32) -> (i32, i32) {
    %c0_i32 = arith.constant 0 : i32
    %c0_i32_0 = arith.constant 0 : i32
    %c0_i32_1 = arith.constant 0 : i32
    return %c0_i32, %c0_i32_0 : i32, i32
  }
  func.func @transform_16(%arg0: i32) -> (i32, i32) {
    %c0_i32 = arith.constant 0 : i32
    %c0_i32_0 = arith.constant 0 : i32
    %c0_i32_1 = arith.constant 0 : i32
    return %c0_i32, %c0_i32_0 : i32, i32
  }
  func.func @transform_17(%arg0: i32) -> (i32, i32) {
    %c0_i32 = arith.constant 0 : i32
    %c0_i32_0 = arith.constant 0 : i32
    return %arg0, %c0_i32 : i32, i32
  }
}

</mosaic_0001>

<bundles_post_ra>
// kernel: forward.1
= control target key start
LH: loop header
LB: loop body
LE: loop exit
PB: predicated region body
PF: predicated region fallthrough
CT: control target
= control target key end

     0   :  { %v2169_v0 = vmov 0.0   ;;  %vm2170_vm0 = vmmov 0   ;;  %vm67_vm1 = vcmask 64512   ;;  %vm244_vm2 = vcmask 719872   ;;  %s2176_s24 = smov 48   ;;  %s2178_s25 = smov 96   ;;  %s3195_s4 = inlined_call_operand.vmem [shape: f32[600,52], index: 4, kind: input, shape index: {}]   ;;  %s3196_s2 = inlined_call_operand.vmem [shape: f32[8,64], index: 2, kind: input, shape index: {}]   ;;  %s3197_s0 = inlined_call_operand.vmem [shape: f32[2,8], index: 0, kind: input, shape index: {}]   ;;  %s3198_s1 = inlined_call_operand.vmem [shape: f32[26,600], index: 1, kind: input, shape index: {}]   ;;  %s3199_s6 = inlined_call_operand.vmem [shape: f32[156,88], index: 6, kind: input, shape index: {}]   ;;  %s3200_s5 = inlined_call_operand.vmem [shape: f32[1,52], index: 5, kind: input, shape index: {}]   ;;  %s3201_s8 = inlined_call_operand.vmem [shape: f32[968,64], index: 8, kind: input, shape index: {}]   ;;  %s3202_s7 = inlined_call_operand.vmem [shape: f32[1,88], index: 7, kind: input, shape index: {}]   ;;  %s3203_s11 = inlined_call_operand.vmem [shape: f32[64,64], index: 11, kind: input, shape index: {}]   ;;  %s3204_s9 = inlined_call_operand.vmem [shape: f32[1,64], index: 9, kind: input, shape index: {}]   ;;  %s3205_s10 = inlined_call_operand.vmem [shape: f32[64,64], index: 10, kind: input, shape index: {}]   ;;  %s3206_s3 = inlined_call_operand.vmem [shape: f32[1,64], index: 3, kind: input, shape index: {}]   ;;  %s3207_s13 = inlined_call_operand.vmem [shape: f32[64,32], index: 13, kind: input, shape index: {}]   ;;  %s3208_s15 = inlined_call_operand.vmem [shape: f32[32,1], index: 15, kind: input, shape index: {}]   ;;  %s3209_s12 = inlined_call_operand.vmem [shape: f32[1,64], index: 12, kind: input, shape index: {}]   ;;  %s3210_s16 = inlined_call_operand.<no memory space> [shape: f32[1,1], index: 16, kind: input, shape index: {}]   ;;  %s3211_s14 = inlined_call_operand.vmem [shape: f32[1,32], index: 14, kind: input, shape index: {}]   ;;  %s3212_s17 = inlined_call_operand.vmem [shape: f32[2,1], index: 17, kind: output, shape index: {}]  }
   0x1   :  { %3214 = sst [smem:[#allocation3_spill]] %s3195_s4  ;;  %1764 = vmatprep.subr.mxu0 %v2169_v0  ;;  %1766 = vmatprep.mubr.msk.f32.mxu0 %vm2170_vm0, %v2169_v0  ;;  %v58_v10 = vld [vmem:[%s3197_s0] sm:$0x3]  ;;  %vm535_vm3 = vcmask 1043456   ;;  %vm2172_vm4 = vmmov 1   ;;  %vm519_vm6 = vcmask 1045504  }
   0x2   :  { %3215 = sst [smem:[#allocation4_spill]] %s3196_s2  ;;  %s3216_s26 = sld [smem:[#allocation3_spill]]  ;;  %vm1978_vm5 = vmpackc.low %vm535_vm3, %vm2172_vm4  ;;  %vm552_vm7 = vcmask 424960   ;;  %vm556_vm8 = vcmask 850944   ;;  %vm587_vm9 = vcmask 228352   ;;  %vm725_vm10 = vcmask 785408  }
   0x3   :  { %s3217_s30 = sld [smem:[#allocation4_spill]]  ;;  %s2179_s27 = smov 16   ;;  %vm727_vm11 = vcmask 457728   ;;  %vm722_vm12 = vcmask 392192   ;;  %vm732_vm13 = vcmask 523264   ;;  %vm866_vm14 = vcmask 588800  }
   0x4   :  { %s2180_s28 = smov 88   ;;  %s2182_s29 = smov 112   ;;  %vm729_vm15 = vcmask 130048  }
   0x5   :  { %s2183_s4 = smov 24  }
   0x8   :  { %v178_v1 = vld [vmem:[%s3216_s26 + $0x80] sm:$0xff]  ;;  %v179_v2 = vld [vmem:[%s3216_s26 + $0x88] sm:$0xff]  ;;  %v180_v14 = vld [vmem:[%s3216_s26 + $0x90] sm:$0xff] }
   0x9   :  { %v59_v3 = vld [vmem:[%s3217_s30] sm:$0xff]  ;;  %v1865_v4 = vpack.c.bf16 %v179_v2, %v178_v1  ;;  %v163_v6 = vld [vmem:[%s3216_s26 + $0x8] sm:$0xff]  ;;  %v181_v15 = vld [vmem:[%s3216_s26 + $0x98] sm:$0xff] }
   0xa   :  { %1765 = vmatpush3.msra.mxu0 %v59_v3  ;;  %v162_v5 = vld [vmem:[%s3216_s26] sm:$0xff]  ;;  %v211_v9 = vld [vmem:[%s3216_s26 + $0x188] sm:$0xff]  ;;  %v1869_v17 = vpack.c.bf16 %v181_v15, %v180_v14  ;;  %v164_v18 = vld [vmem:[%s3216_s26 + $0x10] sm:$0xff] }
   0xb   :  { %v210_v7 = vld [vmem:[%s3216_s26 + $0x180] sm:$0xff]  ;;  %v1867_v8 = vpack.c.bf16 %v163_v6, %v162_v5  ;;  %1866 = vmatprep.subr.bf16.mxu1 %v1865_v4  ;;  %1767 = vmatmul.mubr.msk.f32.vlgmr.msra.gmra.mrb[0].mxu0 %vm67_vm1, %v58_v10  ;;  %v195_v13 = vld [vmem:[%s3216_s26 + $0x108] sm:$0xff]  ;;  %v165_v19 = vld [vmem:[%s3216_s26 + $0x18] sm:$0xff] }
   0xc   :  { %v194_v11 = vld [vmem:[%s3216_s26 + $0x100] sm:$0xff]  ;;  %v1897_v12 = vpack.c.bf16 %v211_v9, %v210_v7  ;;  %v212_v20 = vld [vmem:[%s3216_s26 + $0x190] sm:$0xff]  ;;  %v1871_v21 = vpack.c.bf16 %v165_v19, %v164_v18  ;;  %v213_v22 = vld [vmem:[%s3216_s26 + $0x198] sm:$0xff] }
   0xd   :  { %1868 = vmatpush3.bf16.msra.mxu1 %v1867_v8  ;;  %v1899_v16 = vpack.c.bf16 %v195_v13, %v194_v11  ;;  %v196_v23 = vld [vmem:[%s3216_s26 + $0x110] sm:$0xff]  ;;  %v197_v24 = vld [vmem:[%s3216_s26 + $0x118] sm:$0xff]  ;;  %v1901_v25 = vpack.c.bf16 %v213_v22, %v212_v20  ;;  %v182_v27 = vld [vmem:[%s3216_s26 + $0xa0] sm:$0xff] }
   0xe   :  { %1898 = vmatprep.subr.bf16.mxu0 %v1897_v12  ;;  %1870 = vmatprep.subr.bf16.mxu1 %v1869_v17  ;;  %v1903_v26 = vpack.c.bf16 %v197_v24, %v196_v23  ;;  %v183_v28 = vld [vmem:[%s3216_s26 + $0xa8] sm:$0xff]  ;;  %v166_v29 = vld [vmem:[%s3216_s26 + $0x20] sm:$0xff]  ;;  %v184_v38 = vld [vmem:[%s3216_s26 + $0xb0] sm:$0xff] }
   0xf   :  { %1900 = vmatpush3.bf16.msra.mxu0 %v1899_v16  ;;  %v1873_v30 = vpack.c.bf16 %v183_v28, %v182_v27  ;;  %v167_v31 = vld [vmem:[%s3216_s26 + $0x28] sm:$0xff]  ;;  %v214_v32 = vld [vmem:[%s3216_s26 + $0x1a0] sm:$0xff]  ;;  %v185_v39 = vld [vmem:[%s3216_s26 + $0xb8] sm:$0xff] }
  0x10   :  { %v215_v33 = vld [vmem:[%s3216_s26 + $0x1a8] sm:$0xff]  ;;  %1902 = vmatprep.subr.bf16.mxu0 %v1901_v25  ;;  %v1875_v34 = vpack.c.bf16 %v167_v31, %v166_v29  ;;  %v198_v36 = vld [vmem:[%s3216_s26 + $0x120] sm:$0xff]  ;;  %v168_v40 = vld [vmem:[%s3216_s26 + $0x30] sm:$0xff]  ;;  %v1877_v43 = vpack.c.bf16 %v185_v39, %v184_v38 }
  0x11   :  { %1872 = vmatpush3.bf16.msra.mxu1 %v1871_v21  ;;  %v1905_v35 = vpack.c.bf16 %v215_v33, %v214_v32  ;;  %v199_v37 = vld [vmem:[%s3216_s26 + $0x128] sm:$0xff]  ;;  %v169_v41 = vld [vmem:[%s3216_s26 + $0x38] sm:$0xff]  ;;  %v216_v44 = vld [vmem:[%s3216_s26 + $0x1b0] sm:$0xff] }
  0x12   :  { %1874 = vmatprep.subr.bf16.mxu1 %v1873_v30  ;;  %v1907_v42 = vpack.c.bf16 %v199_v37, %v198_v36  ;;  %v217_v45 = vld [vmem:[%s3216_s26 + $0x1b8] sm:$0xff]  ;;  %v200_v46 = vld [vmem:[%s3216_s26 + $0x130] sm:$0xff]  ;;  %v186_v49 = vld [vmem:[%s3216_s26 + $0xc0] sm:$0xff]  ;;  %v1879_v51 = vpack.c.bf16 %v169_v41, %v168_v40 }
  0x13   :  { %1904 = vmatpush3.bf16.msra.mxu0 %v1903_v26  ;;  %v1909_v47 = vpack.c.bf16 %v217_v45, %v216_v44  ;;  %v201_v48 = vld [vmem:[%s3216_s26 + $0x138] sm:$0xff]  ;;  %v187_v50 = vld [vmem:[%s3216_s26 + $0xc8] sm:$0xff]  ;;  %v218_v52 = vld [vmem:[%s3216_s26 + $0x1c0] sm:$0xff] }
  0x14   :  { %1906 = vmatprep.subr.bf16.mxu0 %v1905_v35  ;;  %v1881_v53 = vpack.c.bf16 %v187_v50, %v186_v49  ;;  %v170_v54 = vld [vmem:[%s3216_s26 + $0x40] sm:$0xff]  ;;  %v171_v55 = vld [vmem:[%s3216_s26 + $0x48] sm:$0xff]  ;;  %v1911_v57 = vpack.c.bf16 %v201_v48, %v200_v46  ;;  %v188_v58 = vld [vmem:[%s3216_s26 + $0xd0] sm:$0xff] }
  0x15   :  { %1876 = vmatpush3.bf16.msra.mxu1 %v1875_v34  ;;  %v219_v56 = vld [vmem:[%s3216_s26 + $0x1c8] sm:$0xff]  ;;  %v189_v59 = vld [vmem:[%s3216_s26 + $0xd8] sm:$0xff]  ;;  %v202_v61 = vld [vmem:[%s3216_s26 + $0x140] sm:$0xff]  ;;  %v1883_v63 = vpack.c.bf16 %v171_v55, %v170_v54 }
  0x16   :  { %1878 = vmatprep.subr.bf16.mxu1 %v1877_v43  ;;  %v1913_v60 = vpack.c.bf16 %v219_v56, %v218_v52  ;;  %v203_v62 = vld [vmem:[%s3216_s26 + $0x148] sm:$0xff]  ;;  %v220_v1 = vld [vmem:[%s3216_s26 + $0x1d0] sm:$0xff]  ;;  %v221_v2 = vld [vmem:[%s3216_s26 + $0x1d8] sm:$0xff]  ;;  %v1885_v3 = vpack.c.bf16 %v189_v59, %v188_v58 }
  0x17   :  { %1908 = vmatpush3.bf16.msra.mxu0 %v1907_v42  ;;  %v172_v4 = vld [vmem:[%s3216_s26 + $0x50] sm:$0xff]  ;;  %v173_v5 = vld [vmem:[%s3216_s26 + $0x58] sm:$0xff]  ;;  %v1915_v6 = vpack.c.bf16 %v203_v62, %v202_v61  ;;  %v190_v7 = vld [vmem:[%s3216_s26 + $0xe0] sm:$0xff]  ;;  %v1917_v9 = vpack.c.bf16 %v221_v2, %v220_v1 }
  0x18   :  { %1910 = vmatprep.subr.bf16.mxu0 %v1909_v47  ;;  %v191_v8 = vld [vmem:[%s3216_s26 + $0xe8] sm:$0xff]  ;;  %v204_v10 = vld [vmem:[%s3216_s26 + $0x150] sm:$0xff]  ;;  %v205_v11 = vld [vmem:[%s3216_s26 + $0x158] sm:$0xff]  ;;  %v1887_v12 = vpack.c.bf16 %v173_v5, %v172_v4 }
  0x19   :  { %1880 = vmatpush3.bf16.msra.mxu1 %v1879_v51  ;;  %v222_v13 = vld [vmem:[%s3216_s26 + $0x1e0] sm:$0xff]  ;;  %v223_v14 = vld [vmem:[%s3216_s26 + $0x1e8] sm:$0xff]  ;;  %v1889_v15 = vpack.c.bf16 %v191_v8, %v190_v7  ;;  %v1919_v19 = vpack.c.bf16 %v205_v11, %v204_v10  ;;  %v192_v20 = vld [vmem:[%s3216_s26 + $0xf0] sm:$0xff] }
  0x1a   :  { %1882 = vmatprep.subr.bf16.mxu1 %v1881_v53  ;;  %v174_v16 = vld [vmem:[%s3216_s26 + $0x60] sm:$0xff]  ;;  %v175_v17 = vld [vmem:[%s3216_s26 + $0x68] sm:$0xff]  ;;  %v193_v21 = vld [vmem:[%s3216_s26 + $0xf8] sm:$0xff]  ;;  %v1921_v22 = vpack.c.bf16 %v223_v14, %v222_v13 }
  0x1b   :  { %1912 = vmatpush3.bf16.msra.mxu0 %v1911_v57  ;;  %v143_v18 = vld [vmem:[%s3198_s1 + $0x8] sm:$0xff]  ;;  %v206_v23 = vld [vmem:[%s3216_s26 + $0x160] sm:$0xff]  ;;  %v145_v25 = vld [vmem:[%s3198_s1 + $0x18] sm:$0xff]  ;;  %v1891_v26 = vpack.c.bf16 %v175_v17, %v174_v16  ;;  %v1893_v29 = vpack.c.bf16 %v193_v21, %v192_v20 }
  0x1c   :  { %1914 = vmatprep.subr.bf16.mxu0 %v1913_v60  ;;  %321 = vmatprep.mubr.f32.mxu1 %v143_v18  ;;  %v207_v24 = vld [vmem:[%s3216_s26 + $0x168] sm:$0xff]  ;;  %v224_v27 = vld [vmem:[%s3216_s26 + $0x1f0] sm:$0xff]  ;;  %v225_v28 = vld [vmem:[%s3216_s26 + $0x1f8] sm:$0xff] }
  0x1d   :  { %1884 = vmatpush3.bf16.msra.mxu1 %v1883_v63  ;;  %406 = vmatprep.mubr.f32.mxu0 %v145_v25  ;;  %v176_v30 = vld [vmem:[%s3216_s26 + $0x70] sm:$0xff]  ;;  %v177_v31 = vld [vmem:[%s3216_s26 + $0x78] sm:$0xff]  ;;  %v1923_v32 = vpack.c.bf16 %v207_v24, %v206_v23  ;;  %v226_v33 = vld [vmem:[%s3216_s26 + $0x200] sm:$0xff]  ;;  %v1925_v35 = vpack.c.bf16 %v225_v28, %v224_v27 }
  0x1e   :  { %1886 = vmatprep.subr.bf16.mxu1 %v1885_v3  ;;  %v227_v34 = vld [vmem:[%s3216_s26 + $0x208] sm:$0xff]  ;;  %v208_v36 = vld [vmem:[%s3216_s26 + $0x170] sm:$0xff]  ;;  %v209_v37 = vld [vmem:[%s3216_s26 + $0x178] sm:$0xff]  ;;  %v1895_v38 = vpack.c.bf16 %v177_v31, %v176_v30 }
  0x1f   :  { %1916 = vmatpush3.bf16.msra.mxu0 %v1915_v6  ;;  %v1929_v39 = vpack.c.bf16 %v227_v34, %v226_v33  ;;  %v1927_v40 = vpack.c.bf16 %v209_v37, %v208_v36  ;;  %v228_v41 = vld [vmem:[%s3216_s26 + $0x210] sm:$0xff]  ;;  %v229_v42 = vld [vmem:[%s3216_s26 + $0x218] sm:$0xff]  ;;  %v142_v43 = vld [vmem:[%s3198_s1] sm:$0xff] }
  0x20   :  { %1918 = vmatprep.subr.bf16.mxu0 %v1917_v9  ;;  %v1933_v44 = vpack.c.bf16 %v229_v42, %v228_v41  ;;  %v148_v45 = vld [vmem:[%s3198_s1 + $0x30] sm:$0xff]  ;;  %v230_v47 = vld [vmem:[%s3216_s26 + $0x220] sm:$0xff]  ;;  %v231_v48 = vld [vmem:[%s3216_s26 + $0x228] sm:$0xff]  ;;  %v2171_v9 = vmov 0.0|0.0  }
  0x21   :  { %1888 = vmatpush3.bf16.msra.mxu1 %v1887_v12  ;;  %v144_v46 = vld [vmem:[%s3198_s1 + $0x10] sm:$0xff]  ;;  %v150_v49 = vld [vmem:[%s3198_s1 + $0x40] sm:$0xff]  ;;  %v147_v50 = vld [vmem:[%s3198_s1 + $0x28] sm:$0xff]  ;;  %v1937_v51 = vpack.c.bf16 %v231_v48, %v230_v47 }
  0x22   :  { %1890 = vmatprep.subr.bf16.mxu1 %v1889_v15  ;;  %v153_v52 = vld [vmem:[%s3198_s1 + $0x58] sm:$0xff]  ;;  %v232_v54 = vld [vmem:[%s3216_s26 + $0x230] sm:$0xff]  ;;  %v155_v56 = vld [vmem:[%s3198_s1 + $0x68] sm:$0xff] }
  0x23   :  { %1920 = vmatpush3.bf16.msra.mxu0 %v1919_v19  ;;  %v149_v53 = vld [vmem:[%s3198_s1 + $0x38] sm:$0xff]  ;;  %v152_v57 = vld [vmem:[%s3198_s1 + $0x50] sm:$0xff]  ;;  %v158_v59 = vld [vmem:[%s3198_s1 + $0x80] sm:$0x3] }
  0x24   :  { %1922 = vmatprep.subr.bf16.mxu0 %v1921_v22  ;;  %v233_v55 = vld [vmem:[%s3216_s26 + $0x238] sm:$0xff]  ;;  %v154_v60 = vld [vmem:[%s3198_s1 + $0x60] sm:$0xff]  ;;  %v235_v62 = vld [vmem:[%s3216_s26 + $0x248] sm:$0xff] }
  0x25   :  { %1892 = vmatpush3.bf16.msra.mxu1 %v1891_v26  ;;  %v1941_v58 = vpack.c.bf16 %v233_v55, %v232_v54  ;;  %v234_v61 = vld [vmem:[%s3216_s26 + $0x240] sm:$0xff]  ;;  %v160_v63 = vld [vmem:[%s3198_s1 + $0x90] sm:$0x3]  ;;  %v157_v1 = vld [vmem:[%s3198_s1 + $0x78] sm:$0x3] }
  0x26   :  { %1894 = vmatprep.subr.bf16.mxu1 %v1893_v29  ;;  %v1945_v2 = vpack.c.bf16 %v235_v62, %v234_v61  ;;  %v146_v3 = vld [vmem:[%s3198_s1 + $0x20] sm:$0xff]  ;;  %v159_v4 = vld [vmem:[%s3198_s1 + $0x88] sm:$0x3]  ;;  %v236_v5 = vld [vmem:[%s3216_s26 + $0x250] sm:$0xff]  ;;  %s2177_s26 = smov 56  }
  0x27   :  { %1924 = vmatpush3.bf16.msra.mxu0 %v1923_v32  ;;  %v151_v6 = vld [vmem:[%s3198_s1 + $0x48] sm:$0xff]  ;;  %v156_v7 = vld [vmem:[%s3198_s1 + $0x70] sm:$0xff]  ;;  %v161_v8 = vld [vmem:[%s3198_s1 + $0x98] sm:$0x3]  ;;  %s2174_s1 = smov 104  }
  0x28   :  { %1926 = vmatprep.subr.bf16.mxu0 %v1925_v35  ;;  %v560_v10 = vld [vmem:[%s3199_s6] sm:$0xff]  ;;  %v561_v11 = vld [vmem:[%s3199_s6 + $0x8] sm:$0xff]  ;;  %v562_v12 = vld [vmem:[%s3199_s6 + $0x10] sm:$0xff] }
  0x29   :  { %1896 = vmatpush3.bf16.msra.mxu1 %v1895_v38  ;;  %v1950_v13 = vpack.c.bf16 %v561_v11, %v560_v10  ;;  %v563_v14 = vld [vmem:[%s3199_s6 + $0x18] sm:$0xff]  ;;  %v564_v16 = vld [vmem:[%s3199_s6 + $0x20] sm:$0xff]  ;;  %v565_v17 = vld [vmem:[%s3199_s6 + $0x28] sm:$0xff] }
  0x2a   :  { %1930 = vmatprep.subr.bf16.mxu1 %v1929_v39  ;;  %v1953_v15 = vpack.c.bf16 %v563_v14, %v562_v12  ;;  %v1956_v18 = vpack.c.bf16 %v565_v17, %v564_v16  ;;  %v566_v19 = vld [vmem:[%s3199_s6 + $0x30] sm:$0xff]  ;;  %v567_v20 = vld [vmem:[%s3199_s6 + $0x38] sm:$0xff]  ;;  %v568_v22 = vld [vmem:[%s3199_s6 + $0x40] sm:$0xff] }
  0x2b   :  { %1928 = vmatpush3.bf16.msra.mxu0 %v1927_v40  ;;  %v1959_v21 = vpack.c.bf16 %v567_v20, %v566_v19  ;;  %v569_v23 = vld [vmem:[%s3199_s6 + $0x48] sm:$0xff]  ;;  %v570_v25 = vld [vmem:[%s3199_s6 + $0x50] sm:$0xff]  ;;  %v571_v26 = vld [vmem:[%s3199_s6 + $0x58] sm:$0xff] }
  0x2c   :  { %322 = vmatmul.mubr.f32.vlgmr.msra.gmra.mrb[0].mxu1 %v142_v43  ;;  %1949 = vmatprep.subr.bf16.mxu0 %v2171_v9  ;;  %v1962_v24 = vpack.c.bf16 %v569_v23, %v568_v22  ;;  %v1965_v27 = vpack.c.bf16 %v571_v26, %v570_v25  ;;  %v572_v28 = vld [vmem:[%s3199_s6 + $0x60] sm:$0xff]  ;;  %v573_v29 = vld [vmem:[%s3199_s6 + $0x68] sm:$0xff]  ;;  %v574_v31 = vld [vmem:[%s3199_s6 + $0x70] sm:$0xff] }
  0x2d   :  { %1932 = vmatpush3.bf16.msra.mxu1 %v1929_v39  ;;  %326 = vmatprep.mubr.f32.mxu1 %v148_v45  ;;  %v1968_v30 = vpack.c.bf16 %v573_v29, %v572_v28  ;;  %v575_v32 = vld [vmem:[%s3199_s6 + $0x78] sm:$0xff]  ;;  %v576_v34 = vld [vmem:[%s3199_s6 + $0x80] sm:$0xff]  ;;  %v577_v35 = vld [vmem:[%s3199_s6 + $0x88] sm:$0xff] }
  0x2e   :  { %407 = vmatmul.mubr.f32.vlgmr.msra.gmra.mrb[2].mxu0 %v144_v46  ;;  %1934 = vmatprep.subr.bf16.mxu1 %v1933_v44  ;;  %v1971_v33 = vpack.c.bf16 %v575_v32, %v574_v31  ;;  %v1974_v36 = vpack.c.bf16 %v577_v35, %v576_v34  ;;  %v1503_v40 = vld [vmem:[%s3200_s5] ss:$0 sm:$0xff]  ;;  %v579_v10 = vld [vmem:[%s3199_s6 + $0x98] sm:$0xf]  ;;  %s2181_s5 = smov 64  }
  0x2f   :  { %411 = vmatprep.mubr.f32.mxu0 %v150_v49  ;;  %1951 = vmatpush1.bf16.msra.mxu0 %v1950_v13 }
  0x30   :  { %327 = vmatmul.mubr.f32.gmra.mrb[2].mxu1 %v147_v50  ;;  %1952 = vmatprep.subr.bf16.mxu0 %v2171_v9 }
  0x31   :  { %1936 = vmatpush3.bf16.msra.mxu1 %v1933_v44  ;;  %331 = vmatprep.mubr.f32.mxu1 %v153_v52 }
  0x32   :  { %1938 = vmatprep.subr.bf16.mxu1 %v1937_v51  ;;  %412 = vmatmul.mubr.f32.gmra.mrb[4].mxu0 %v149_v53 }
  0x33   :  { %416 = vmatprep.mubr.f32.mxu0 %v155_v56  ;;  %1954 = vmatpush1.bf16.msra.mxu0 %v1953_v15 }
  0x34   :  { %332 = vmatmul.mubr.f32.gmra.mrb[4].mxu1 %v152_v57  ;;  %1955 = vmatprep.subr.bf16.mxu0 %v2171_v9 }
  0x35   :  { %1940 = vmatpush3.bf16.msra.mxu1 %v1937_v51  ;;  %336 = vmatprep.mubr.f32.mxu1 %v158_v59 }
  0x36   :  { %1942 = vmatprep.subr.bf16.mxu1 %v1941_v58  ;;  %417 = vmatmul.mubr.f32.gmra.mrb[6].mxu0 %v154_v60 }
  0x37   :  { %421 = vmatprep.mubr.f32.mxu0 %v160_v63  ;;  %1957 = vmatpush1.bf16.msra.mxu0 %v1956_v18 }
  0x38   :  { %337 = vmatmul.mubr.f32.gmra.mrb[6].mxu1 %v157_v1  ;;  %1958 = vmatprep.subr.bf16.mxu0 %v2171_v9 }
  0x39   :  { %1944 = vmatpush3.bf16.msra.mxu1 %v1941_v58  ;;  %1791 = vmatprep.mubr.msk.f32.mxu1 %vm244_vm2, %v146_v3 }
  0x3a   :  { %1946 = vmatprep.subr.bf16.mxu1 %v1945_v2  ;;  %422 = vmatmul.mubr.f32.gmra.mrb[8].mxu0 %v159_v4 }
  0x3b   :  { %1960 = vmatpush1.bf16.msra.mxu0 %v1959_v21 }
  0x3c   :  { %1961 = vmatprep.subr.bf16.mxu0 %v2171_v9 }
  0x3d   :  { %1948 = vmatpush3.bf16.msra.mxu1 %v1945_v2 }
  0x3e   :  { %1789 = vmatprep.subr.mxu1 %v236_v5 }
  0x3f   :  { %1963 = vmatpush1.bf16.msra.mxu0 %v1962_v24 }
  0x40   :  { %1964 = vmatprep.subr.bf16.mxu0 %v2171_v9 }
  0x41   :  { %1790 = vmatpush3.msra.mxu1 %v236_v5 }
  0x42   :  { %1792 = vmatmul.mubr.msk.f32.vlgmr.msra.gmra.mrb[8].mxu1 %vm244_vm2, %v151_v6 }
  0x43   :  { %1794 = vmatprep.mubr.msk.f32.mxu1 %vm244_vm2, %v156_v7  ;;  %1966 = vmatpush1.bf16.msra.mxu0 %v1965_v27 }
  0x44   :  { %1967 = vmatprep.subr.bf16.mxu0 %v2171_v9 }
  0x46   :  { %1795 = vmatmul.mubr.msk.f32.gmra.mrb[10].mxu1 %vm244_vm2, %v161_v8  ;;  %v578_v8 = vld [vmem:[%s3199_s6 + $0x90] sm:$0xff]  ;;  %s2173_s6 = smov 52  }
  0x47   :  { %1969 = vmatpush1.bf16.msra.mxu0 %v1968_v30  ;;  %v1977_v12 = vpack.c.bf16 %v579_v10, %v578_v8  ;;  %v791_v10 = vld [vmem:[%s3201_s8 + $0x1a8] sm:$0xff] }
  0x48   :  { %1970 = vmatprep.subr.bf16.mxu0 %v2171_v9 }
  0x4b   :  { %1972 = vmatpush1.bf16.msra.mxu0 %v1971_v33 }
  0x4c   :  { %1973 = vmatprep.subr.bf16.mxu0 %v2171_v9 }
  0x4f   :  { %1975 = vmatpush1.bf16.msra.mxu0 %v1974_v36 }
  0x50   :  { %1976 = vmatprep.subr.bf16.mxu0 %v2171_v9 }
  0x53   :  { %1979 = vmatpush1.bf16.msk.msra.mxu0 %vm1978_vm5, %v1977_v12  ;;  %v741_v12 = vld [vmem:[%s3201_s8 + $0x18] sm:$0xff] }
  0xde   :  { %v2637_v37 = vpop.f32.mrb[0].mxu0 }
  0xdf   :  { %v1768_v38 = vpop.f32.mrb[1].mxu0 }
  0xff   :  { %v1556_v39 = vpop.f32.mrb[0].mxu1 }
 0x100   :  { %v1557_v41 = vpop.f32.mrb[1].mxu1 }
 0x101   :  { %v1558_v42 = vadd.f32 %v1557_v41, %v1556_v39  ;;  %v1600_v43 = vpop.f32.mrb[2].mxu0 }
 0x102   :  { %v1601_v44 = vpop.f32.mrb[3].mxu0 }
 0x103   :  { %v324_v45 = vadd.f32 %v1558_v42, %v1503_v40  ;;  %v1602_v46 = vadd.f32 %v1601_v44, %v1600_v43  ;;  %v1559_v47 = vpop.f32.mrb[2].mxu1 }
 0x104   :  { %v1560_v48 = vpop.f32.mrb[3].mxu1 }
 0x105   :  { %v1561_v49 = vadd.f32 %v1560_v48, %v1559_v47  ;;  %v1603_v50 = vpop.f32.mrb[4].mxu0  ;;  %v409_v51 = vadd.f32 %v1602_v46, %v324_v45 }
 0x106   :  { %v1604_v52 = vpop.f32.mrb[5].mxu0 }
 0x107   :  { %v329_v53 = vadd.f32 %v1561_v49, %v1503_v40  ;;  %v1605_v54 = vadd.f32 %v1604_v52, %v1603_v50  ;;  %v1562_v55 = vpop.f32.mrb[4].mxu1  ;;  %v786_v50 = vld [vmem:[%s3201_s8 + $0x180] sm:$0xff] }
 0x108   :  { %v1563_v56 = vpop.f32.mrb[5].mxu1  ;;  %v770_v52 = vld [vmem:[%s3201_s8 + $0x100] sm:$0xff] }
 0x109   :  { %v1564_v57 = vadd.f32 %v1563_v56, %v1562_v55  ;;  %v1606_v58 = vpop.f32.mrb[6].mxu0  ;;  %v414_v59 = vadd.f32 %v1605_v54, %v329_v53  ;;  %v771_v54 = vld [vmem:[%s3201_s8 + $0x108] sm:$0xff]  ;;  %v754_v55 = vld [vmem:[%s3201_s8 + $0x80] sm:$0xff] }
 0x10a   :  { %v1607_v60 = vpop.f32.mrb[7].mxu0  ;;  %v755_v56 = vld [vmem:[%s3201_s8 + $0x88] sm:$0xff] }
 0x10b   :  { %v334_v61 = vadd.f32 %v1564_v57, %v1503_v40  ;;  %v1608_v62 = vadd.f32 %v1607_v60, %v1606_v58  ;;  %v1565_v63 = vpop.f32.mrb[6].mxu1  ;;  %v2014_v57 = vpack.c.bf16 %v771_v54, %v770_v52  ;;  %v1980_v58 = vpack.c.bf16 %v755_v56, %v754_v55  ;;  %v789_v60 = vld [vmem:[%s3201_s8 + $0x198] sm:$0xff]  ;;  %v798_v56 = vld [vmem:[%s3201_s8 + $0x1e0] sm:$0xff] }
 0x10c   :  { %v1566_v1 = vpop.f32.mrb[7].mxu1  ;;  %v781_v54 = vld [vmem:[%s3201_s8 + $0x158] sm:$0xff] }
 0x10d   :  { %v1567_v2 = vadd.f32 %v1566_v1, %v1565_v63  ;;  %v1609_v3 = vpop.f32.mrb[8].mxu0  ;;  %v419_v4 = vadd.f32 %v1608_v62, %v334_v61  ;;  %v738_v61 = vld [vmem:[%s3201_s8] sm:$0xff]  ;;  %v739_v63 = vld [vmem:[%s3201_s8 + $0x8] sm:$0xff]  ;;  %v772_v1 = vld [vmem:[%s3201_s8 + $0x110] sm:$0xff]  ;;  %1981 = vmatprep.subr.bf16.mxu1 %v1980_v58 }
 0x10e   :  { %v1610_v5 = vpop.f32.mrb[9].mxu0 }
 0x10f   :  { %v339_v6 = vadd.f32 %v1567_v2, %v1503_v40  ;;  %v1611_v7 = vadd.f32 %v1610_v5, %v1609_v3  ;;  %v773_v2 = vld [vmem:[%s3201_s8 + $0x118] sm:$0xff]  ;;  %v1982_v3 = vpack.c.bf16 %v739_v63, %v738_v61  ;;  %v756_v5 = vld [vmem:[%s3201_s8 + $0x90] sm:$0xff]  ;;  %v782_v63 = vld [vmem:[%s3201_s8 + $0x160] sm:$0xff] }
 0x111   :  { %v424_v11 = vadd.f32 %v1611_v7, %v339_v6  ;;  %v757_v6 = vld [vmem:[%s3201_s8 + $0x98] sm:$0xff]  ;;  %v790_v7 = vld [vmem:[%s3201_s8 + $0x1a0] sm:$0xff]  ;;  %1983 = vmatpush3.bf16.msra.mxu1 %v1982_v3 }
 0x112   :  { %v1984_v8 = vpack.c.bf16 %v757_v6, %v756_v5  ;;  %v767_v5 = vld [vmem:[%s3201_s8 + $0xe8] sm:$0xff]  ;;  %v800_v6 = vld [vmem:[%s3201_s8 + $0x1f0] sm:$0xff] }
 0x114   :  { %1985 = vmatprep.subr.bf16.mxu1 %v1984_v8  ;;  %v801_v8 = vld [vmem:[%s3201_s8 + $0x1f8] sm:$0xff] }
 0x115   :  { %v1793_v13 = vpop.f32.mrb[8].mxu1 }
 0x116   :  { %v499_v14 = vadd.f32 %v1793_v13, %v414_v59  ;;  %v493_v15 = vpop.f32.mrb[9].mxu1  ;;  %v788_v59 = vld [vmem:[%s3201_s8 + $0x190] sm:$0xff]  ;;  %v2020_v13 = vpack.c.bf16 %v791_v10, %v790_v7  ;;  %v750_v10 = vld [vmem:[%s3201_s8 + $0x60] sm:$0xff] }
 0x117   :  { %v494_v16 = vadd.f32 %v493_v15, %v409_v51  ;;  %v787_v51 = vld [vmem:[%s3201_s8 + $0x188] sm:$0xff]  ;;  %v2016_v62 = vpack.c.bf16 %v789_v60, %v788_v59  ;;  %v774_v15 = vld [vmem:[%s3201_s8 + $0x120] sm:$0xff]  ;;  %v748_v59 = vld [vmem:[%s3201_s8 + $0x50] sm:$0xff] }
 0x118   :  { %v513_v17 = vmax.f32 %v499_v14, 0.0  ;;  %v2012_v53 = vpack.c.bf16 %v787_v51, %v786_v50  ;;  %v764_v50 = vld [vmem:[%s3201_s8 + $0xd0] sm:$0xff]  ;;  %v765_v51 = vld [vmem:[%s3201_s8 + $0xd8] sm:$0xff] }
 0x119   :  { %v512_v18 = vmax.f32 %v494_v16, 0.0  ;;  %v1796_v19 = vpop.f32.mrb[10].mxu1  ;;  %v775_v16 = vld [vmem:[%s3201_s8 + $0x128] sm:$0xff]  ;;  %v2000_v58 = vpack.c.bf16 %v765_v51, %v764_v50  ;;  %v749_v60 = vld [vmem:[%s3201_s8 + $0x58] sm:$0xff]  ;;  %v834_v50 = vld [vmem:[%s3201_s8 + $0x300] sm:$0xff] }
 0x11a   :  { %v509_v20 = vadd.f32 %v1796_v19, %v424_v11  ;;  %v503_v21 = vpop.f32.mrb[11].mxu1  ;;  %v521_v22 = vrot.slane %v513_v17, 2  ;;  %v537_v25 = vrot.slane %v513_v17, 4  ;;  %2013 = vmatprep.subr.bf16.mxu0 %v2012_v53  ;;  %v740_v11 = vld [vmem:[%s3201_s8 + $0x10] sm:$0xff]  ;;  %v835_v51 = vld [vmem:[%s3201_s8 + $0x308] sm:$0xff] }
 0x11b   :  { %v504_v23 = vadd.f32 %v503_v21, %v419_v4  ;;  %v520_v24 = vrot.slane %v512_v18, 2  ;;  %v536_v26 = vrot.slane %v512_v18, 4  ;;  %v2018_v4 = vpack.c.bf16 %v773_v2, %v772_v1  ;;  %v792_v19 = vld [vmem:[%s3201_s8 + $0x1b0] sm:$0xff]  ;;  %v783_v1 = vld [vmem:[%s3201_s8 + $0x168] sm:$0xff] }
 0x11c   :  { %v515_v30 = vmax.f32 %v509_v20, 0.0  ;;  %v1986_v14 = vpack.c.bf16 %v741_v12, %v740_v11  ;;  %v793_v20 = vld [vmem:[%s3201_s8 + $0x1b8] sm:$0xff]  ;;  %v2022_v21 = vpack.c.bf16 %v775_v16, %v774_v15  ;;  %v780_v53 = vld [vmem:[%s3201_s8 + $0x150] sm:$0xff]  ;;  %v2002_v2 = vpack.c.bf16 %v749_v60, %v748_v59  ;;  %v751_v11 = vld [vmem:[%s3201_s8 + $0x68] sm:$0xff] }
 0x11d   :  { %v514_v27 = vmax.f32 %v504_v23, 0.0  ;;  %v522_v28 = vsel %vm519_vm6, %v520_v24, %v521_v22  ;;  %v538_v33 = vsel %vm535_vm3, %v536_v26, %v537_v25  ;;  %v742_v23 = vld [vmem:[%s3201_s8 + $0x20] sm:$0xff]  ;;  %v743_v24 = vld [vmem:[%s3201_s8 + $0x28] sm:$0xff]  ;;  %v2024_v26 = vpack.c.bf16 %v793_v20, %v792_v19  ;;  %v785_v15 = vld [vmem:[%s3201_s8 + $0x178] sm:$0xff] }
 0x11e   :  { %525 = vrot.lane.b32.xlu0 %v522_v28, %s2173_s6  ;;  %v541_v34 = vrot.slane %v515_v30, 4  ;;  %v760_v28 = vld [vmem:[%s3201_s8 + $0xb0] sm:$0xff]  ;;  %1987 = vmatpush3.bf16.msra.mxu1 %v1986_v14  ;;  %v1990_v30 = vpack.c.bf16 %v743_v24, %v742_v23  ;;  %v2034_v61 = vpack.c.bf16 %v781_v54, %v780_v53  ;;  %v2038_v3 = vpack.c.bf16 %v783_v1, %v782_v63  ;;  %v803_v59 = vld [vmem:[%s3201_s8 + $0x208] sm:$0xff]  ;;  %v821_v63 = vld [vmem:[%s3201_s8 + $0x298] sm:$0xff] }
 0x11f   :  { %v523_v29 = vrot.slane %v514_v27, 2  ;;  %v539_v31 = vrot.slane %v514_v27, 4  ;;  %v2040_v12 = vpack.c.bf16 %v801_v8, %v800_v6  ;;  %v784_v14 = vld [vmem:[%s3201_s8 + $0x170] sm:$0xff] }
 0x120   :  { %v2042_v16 = vpack.c.bf16 %v785_v15, %v784_v14  ;;  %v752_v20 = vld [vmem:[%s3201_s8 + $0x70] sm:$0xff]  ;;  %v823_v14 = vld [vmem:[%s3201_s8 + $0x2a8] sm:$0xff] }
 0x121   :  { %v524_v32 = vsel %vm519_vm6, %v521_v22, %v523_v29  ;;  %v540_v35 = vsel %vm535_vm3, %v537_v25, %v539_v31  ;;  %v542_v36 = vsel %vm535_vm3, %v539_v31, %v541_v34  ;;  %v776_v25 = vld [vmem:[%s3201_s8 + $0x130] sm:$0xff]  ;;  %v794_v31 = vld [vmem:[%s3201_s8 + $0x1c0] sm:$0xff]  ;;  %vm1495_vm3 = vcmask 1024  }
 0x122   :  { %527 = vrot.lane.b32.xlu1 %v524_v32, %s2173_s6  ;;  %543 = vrot.lane.b32.xlu0 %v538_v33, %s2174_s1  ;;  %v795_v32 = vld [vmem:[%s3201_s8 + $0x1c8] sm:$0xff]  ;;  %v744_v34 = vld [vmem:[%s3201_s8 + $0x30] sm:$0xff] }
 0x123   :  { %v836_v60 = vld [vmem:[%s3201_s8 + $0x310] sm:$0xff] }
 0x126   :  { %545 = vrot.lane.b32.xlu1 %v540_v35, %s2174_s1  ;;  %529 = vrot.lane.b32.xlu0 %v523_v29, %s2173_s6  ;;  %v761_v29 = vld [vmem:[%s3201_s8 + $0xb8] sm:$0xff] }
 0x127   :  { %v1992_v33 = vpack.c.bf16 %v761_v29, %v760_v28  ;;  %v745_v35 = vld [vmem:[%s3201_s8 + $0x38] sm:$0xff]  ;;  %v819_v28 = vld [vmem:[%s3201_s8 + $0x288] sm:$0xff] }
 0x12a   :  { %547 = vrot.lane.b32.xlu1 %v542_v36, %s2174_s1 }
 0x190   :  { %v526_v38 = vpop.permute.xlu0 %525 }
 0x191   :  { %v553_v39 = vsel %vm552_vm7, %v512_v18, %v526_v38  ;;  %v759_v18 = vld [vmem:[%s3201_s8 + $0xa8] sm:$0xff]  ;;  %v762_v38 = vld [vmem:[%s3201_s8 + $0xc0] sm:$0xff] }
 0x194   :  { %v528_v40 = vpop.permute.xlu1 %527  ;;  %v544_v41 = vpop.permute.xlu0 %543 }
 0x195   :  { %v557_v42 = vsel %vm556_vm8, %v553_v39, %v544_v41  ;;  %1510 = vmatprep.mubr.msk.f32.mxu0 %vm587_vm9, %v544_v41  ;;  %v554_v43 = vsel %vm552_vm7, %v513_v17, %v528_v40  ;;  %v758_v17 = vld [vmem:[%s3201_s8 + $0xa0] sm:$0xff]  ;;  %v763_v39 = vld [vmem:[%s3201_s8 + $0xc8] sm:$0xff]  ;;  %v2028_v40 = vpack.c.bf16 %v795_v32, %v794_v31 }
 0x196   :  { %662 = vmatmul.mubr.f32.vlgmr.msra.gmra.mrb[10].mxu0 %v557_v42  ;;  %v1988_v22 = vpack.c.bf16 %v759_v18, %v758_v17  ;;  %v778_v41 = vld [vmem:[%s3201_s8 + $0x140] sm:$0xff]  ;;  %v779_v42 = vld [vmem:[%s3201_s8 + $0x148] sm:$0xff]  ;;  %v768_v17 = vld [vmem:[%s3201_s8 + $0xf0] sm:$0xff] }
 0x197   :  { %2015 = vmatpush3.bf16.msra.mxu0 %v2014_v57  ;;  %v799_v57 = vld [vmem:[%s3201_s8 + $0x1e8] sm:$0xff]  ;;  %v769_v18 = vld [vmem:[%s3201_s8 + $0xf8] sm:$0xff] }
 0x198   :  { %v546_v44 = vpop.permute.xlu1 %545  ;;  %v530_v45 = vpop.permute.xlu0 %529  ;;  %2017 = vmatprep.subr.bf16.mxu0 %v2016_v62  ;;  %1989 = vmatprep.subr.bf16.mxu1 %v1988_v22  ;;  %v2036_v62 = vpack.c.bf16 %v799_v57, %v798_v56  ;;  %v2008_v19 = vpack.c.bf16 %v769_v18, %v768_v17  ;;  %v1508_v22 = vld [vmem:[%s3202_s7] ss:$0 sm:$0xff]  ;;  %s2175_s7 = smov 8  }
 0x199   :  { %1511 = vmatprep.mubr.msk.f32.mxu0 %vm587_vm9, %v546_v44  ;;  %v558_v46 = vsel %vm556_vm8, %v554_v43, %v546_v44  ;;  %v555_v47 = vsel %vm552_vm7, %v514_v27, %v530_v45  ;;  %v777_v27 = vld [vmem:[%s3201_s8 + $0x138] sm:$0xff]  ;;  %1991 = vmatpush3.bf16.msra.mxu1 %v1990_v30  ;;  %v1994_v43 = vpack.c.bf16 %v745_v35, %v744_v34  ;;  %v796_v44 = vld [vmem:[%s3201_s8 + $0x1d0] sm:$0xff]  ;;  %v802_v56 = vld [vmem:[%s3201_s8 + $0x200] sm:$0xff] }
 0x19a   :  { %667 = vmatmul.mubr.f32.gmra.mrb[12].mxu0 %v558_v46  ;;  %v2026_v36 = vpack.c.bf16 %v777_v27, %v776_v25  ;;  %v797_v45 = vld [vmem:[%s3201_s8 + $0x1d8] sm:$0xff]  ;;  %1993 = vmatprep.subr.bf16.mxu1 %v1992_v33  ;;  %v1996_v46 = vpack.c.bf16 %v763_v39, %v762_v38  ;;  %v818_v27 = vld [vmem:[%s3201_s8 + $0x280] sm:$0xff] }
 0x19b   :  { %2019 = vmatpush3.bf16.msra.mxu0 %v2018_v4  ;;  %v2032_v52 = vpack.c.bf16 %v797_v45, %v796_v44  ;;  %v766_v4 = vld [vmem:[%s3201_s8 + $0xe0] sm:$0xff]  ;;  %v2044_v29 = vpack.c.bf16 %v819_v28, %v818_v27 }
 0x19c   :  { %v548_v48 = vpop.permute.xlu1 %547  ;;  %2021 = vmatprep.subr.bf16.mxu0 %v2020_v13  ;;  %v2004_v7 = vpack.c.bf16 %v767_v5, %v766_v4  ;;  %v2006_v13 = vpack.c.bf16 %v751_v11, %v750_v10  ;;  %v804_v5 = vld [vmem:[%s3201_s8 + $0x210] sm:$0xff]  ;;  %v805_v10 = vld [vmem:[%s3201_s8 + $0x218] sm:$0xff]  ;;  %v838_v11 = vld [vmem:[%s3201_s8 + $0x320] sm:$0xff] }
 0x19d   :  { %1512 = vmatprep.mubr.msk.f32.mxu0 %vm587_vm9, %v548_v48  ;;  %v559_v49 = vsel %vm556_vm8, %v555_v47, %v548_v48  ;;  %v746_v47 = vld [vmem:[%s3201_s8 + $0x40] sm:$0xff]  ;;  %v747_v48 = vld [vmem:[%s3201_s8 + $0x48] sm:$0xff]  ;;  %1995 = vmatpush3.bf16.msra.mxu1 %v1994_v43  ;;  %v2050_v17 = vpack.c.bf16 %v805_v10, %v804_v5 }
 0x19e   :  { %672 = vmatmul.mubr.f32.gmra.mrb[14].mxu0 %v559_v49  ;;  %v2030_v49 = vpack.c.bf16 %v779_v42, %v778_v41  ;;  %v1998_v55 = vpack.c.bf16 %v747_v48, %v746_v47  ;;  %1997 = vmatprep.subr.bf16.mxu1 %v1996_v46  ;;  %v850_v10 = vld [vmem:[%s3201_s8 + $0x380] sm:$0xff] }
 0x19f   :  { %2023 = vmatpush3.bf16.msra.mxu0 %v2022_v21  ;;  %v753_v21 = vld [vmem:[%s3201_s8 + $0x78] sm:$0xff] }
 0x1a0   :  { %2025 = vmatprep.subr.bf16.mxu0 %v2024_v26  ;;  %v2010_v23 = vpack.c.bf16 %v753_v21, %v752_v20 }
 0x1a1   :  { %1999 = vmatpush3.bf16.msra.mxu1 %v1998_v55  ;;  %v2077_v55 = vpack.c.bf16 %v835_v51, %v834_v50  ;;  %v813_v51 = vld [vmem:[%s3201_s8 + $0x258] sm:$0xff] }
 0x1a2   :  { %2001 = vmatprep.subr.bf16.mxu1 %v2000_v58 }
 0x1a3   :  { %2027 = vmatpush3.bf16.msra.mxu0 %v2026_v36 }
 0x1a4   :  { %2029 = vmatprep.subr.bf16.mxu0 %v2028_v40 }
 0x1a5   :  { %2003 = vmatpush3.bf16.msra.mxu1 %v2002_v2 }
 0x1a6   :  { %2005 = vmatprep.subr.bf16.mxu1 %v2004_v7 }
 0x1a7   :  { %2031 = vmatpush3.bf16.msra.mxu0 %v2030_v49 }
 0x1a8   :  { %2033 = vmatprep.subr.bf16.mxu0 %v2032_v52 }
 0x1a9   :  { %2007 = vmatpush3.bf16.msra.mxu1 %v2006_v13  ;;  %v822_v13 = vld [vmem:[%s3201_s8 + $0x2a0] sm:$0xff] }
 0x1aa   :  { %2009 = vmatprep.subr.bf16.mxu1 %v2008_v19  ;;  %v806_v19 = vld [vmem:[%s3201_s8 + $0x220] sm:$0xff]  ;;  %v2052_v21 = vpack.c.bf16 %v823_v14, %v822_v13  ;;  %v852_v14 = vld [vmem:[%s3201_s8 + $0x390] sm:$0xff] }
 0x1ab   :  { %2035 = vmatpush3.bf16.msra.mxu0 %v2034_v61  ;;  %v837_v61 = vld [vmem:[%s3201_s8 + $0x318] sm:$0xff] }
 0x1ac   :  { %2037 = vmatprep.subr.bf16.mxu0 %v2036_v62  ;;  %v820_v62 = vld [vmem:[%s3201_s8 + $0x290] sm:$0xff]  ;;  %v2080_v4 = vpack.c.bf16 %v837_v61, %v836_v60  ;;  %v815_v61 = vld [vmem:[%s3201_s8 + $0x268] sm:$0xff] }
 0x1ad   :  { %2011 = vmatpush3.bf16.msra.mxu1 %v2010_v23  ;;  %v2048_v8 = vpack.c.bf16 %v821_v63, %v820_v62  ;;  %v840_v23 = vld [vmem:[%s3201_s8 + $0x330] sm:$0xff]  ;;  %v849_v63 = vld [vmem:[%s3201_s8 + $0x378] sm:$0xff] }
 0x1ae   :  { %2045 = vmatprep.subr.bf16.mxu1 %v2044_v29  ;;  %v848_v62 = vld [vmem:[%s3201_s8 + $0x370] sm:$0xff] }
 0x1af   :  { %2039 = vmatpush3.bf16.msra.mxu0 %v2038_v3  ;;  %v2046_v3 = vpack.c.bf16 %v803_v59, %v802_v56  ;;  %v831_v56 = vld [vmem:[%s3201_s8 + $0x2e8] sm:$0xff]  ;;  %v814_v59 = vld [vmem:[%s3201_s8 + $0x260] sm:$0xff]  ;;  %v2098_v5 = vpack.c.bf16 %v849_v63, %v848_v62  ;;  %v1153_v62 = vld [vmem:[%s3205_s10 + $0x18] sm:$0xff] }
 0x1b0   :  { %2041 = vmatprep.subr.bf16.mxu0 %v2040_v12  ;;  %v839_v12 = vld [vmem:[%s3201_s8 + $0x328] sm:$0xff] }
 0x1b1   :  { %v2083_v18 = vpack.c.bf16 %v839_v12, %v838_v11  ;;  %v851_v11 = vld [vmem:[%s3201_s8 + $0x388] sm:$0xff] }
 0x1b2   :  { %v2101_v13 = vpack.c.bf16 %v851_v11, %v850_v10 }
 0x1b3   :  { %2043 = vmatpush3.bf16.msra.mxu0 %v2042_v16 }
 0x1b4   :  { %2076 = vmatprep.subr.bf16.mxu0 %v2171_v9 }
 0x269   :  { %v663_v24 = vpop.f32.mrb[10].mxu0 }
 0x26a   :  { %v664_v25 = vadd.f32 %v1508_v22, %v663_v24  ;;  %v665_v26 = vpop.f32.mrb[11].mxu0  ;;  %v841_v24 = vld [vmem:[%s3201_s8 + $0x338] sm:$0xff] }
 0x26b   :  { %v825_v26 = vld [vmem:[%s3201_s8 + $0x2b8] sm:$0xff]  ;;  %v2086_v29 = vpack.c.bf16 %v841_v24, %v840_v23 }
 0x26c   :  { %v2860_v30 = vmax.f32 %v664_v25, 0.0  ;;  %v824_v25 = vld [vmem:[%s3201_s8 + $0x2b0] sm:$0xff] }
 0x26d   :  { %v668_v31 = vpop.f32.mrb[12].mxu0 }
 0x26e   :  { %v669_v32 = vadd.f32 %v1508_v22, %v668_v31  ;;  %v670_v33 = vpop.f32.mrb[13].mxu0  ;;  %v689_v34 = vrot.slane %v2860_v30, 6  ;;  %v685_v35 = vrot.slane %v2860_v30, 4  ;;  %v681_v43 = vrot.slane %v2860_v30, 2 }
 0x26f   :  { %v2056_v31 = vpack.c.bf16 %v825_v26, %v824_v25  ;;  %v842_v33 = vld [vmem:[%s3201_s8 + $0x340] sm:$0xff] }
 0x270   :  { %v678_v36 = vmax.f32 %v669_v32, 0.0  ;;  %690 = vrot.lane.b32.xlu1 %v689_v34, %s2175_s7  ;;  %686 = vrot.lane.b32.xlu0 %v685_v35, %s2176_s24  ;;  %v809_v32 = vld [vmem:[%s3201_s8 + $0x238] sm:$0xff]  ;;  %v843_v34 = vld [vmem:[%s3201_s8 + $0x348] sm:$0xff] }
 0x271   :  { %v673_v38 = vpop.f32.mrb[14].mxu0  ;;  %v826_v35 = vld [vmem:[%s3201_s8 + $0x2c0] sm:$0xff] }
 0x272   :  { %v675_v39 = vpop.f32.mrb[15].mxu0  ;;  %v697_v40 = vrot.slane %v678_v36, 2  ;;  %v674_v41 = vadd.f32 %v1508_v22, %v673_v38  ;;  %v701_v42 = vrot.slane %v678_v36, 4  ;;  %v705_v45 = vrot.slane %v678_v36, 6  ;;  %v807_v22 = vld [vmem:[%s3201_s8 + $0x228] sm:$0xff]  ;;  %v858_v26 = vld [vmem:[%s3201_s8 + $0x3c0] sm:$0xff] }
 0x273   :  { %v2054_v28 = vpack.c.bf16 %v807_v22, %v806_v19  ;;  %v2089_v39 = vpack.c.bf16 %v843_v34, %v842_v33  ;;  %v1162_v33 = vld [vmem:[%s3203_s11 + $0x20] sm:$0xff]  ;;  %v1163_v34 = vld [vmem:[%s3203_s11 + $0x28] sm:$0xff] }
 0x274   :  { %698 = vrot.lane.b32.xlu1 %v697_v40, %s2177_s26  ;;  %694 = vrot.lane.b32.xlu0 %v678_v36, %s2178_s25  ;;  %v679_v44 = vmax.f32 %v674_v41, 0.0  ;;  %v827_v36 = vld [vmem:[%s3201_s8 + $0x2c8] sm:$0xff]  ;;  %v810_v40 = vld [vmem:[%s3201_s8 + $0x240] sm:$0xff] }
 0x275   :  { %v2060_v41 = vpack.c.bf16 %v827_v36, %v826_v35  ;;  %v2119_v35 = vpack.c.bf16 %v1163_v34, %v1162_v33  ;;  %v1164_v36 = vld [vmem:[%s3203_s11 + $0x30] sm:$0xff]  ;;  %v22_v33 = vstv %s3210_s16  ;;  %v1518_v34 = vld [vmem:[%s3211_s14] ss:$0 sm:$0xff] }
 0x276   :  { %v717_v46 = vrot.slane %v679_v44, 4  ;;  %v713_v47 = vrot.slane %v679_v44, 2  ;;  %23 = vst [vmem:[#allocation2] sm:$0x1] %v22_v33 }
 0x278   :  { %702 = vrot.lane.b32.xlu1 %v701_v42, %s2179_s27  ;;  %682 = vrot.lane.b32.xlu0 %v681_v43, %s2180_s28  ;;  %v811_v42 = vld [vmem:[%s3201_s8 + $0x248] sm:$0xff]  ;;  %v844_v43 = vld [vmem:[%s3201_s8 + $0x350] sm:$0xff] }
 0x27c   :  { %706 = vrot.lane.b32.xlu0 %v705_v45, %s2174_s1  ;;  %710 = vrot.lane.b32.xlu1 %v679_v44, %s2181_s5  ;;  %v845_v44 = vld [vmem:[%s3201_s8 + $0x358] sm:$0xff]  ;;  %v828_v45 = vld [vmem:[%s3201_s8 + $0x2d0] sm:$0xff] }
 0x280   :  { %718 = vrot.lane.b32.xlu1 %v717_v46, %s2182_s29  ;;  %714 = vrot.lane.b32.xlu0 %v713_v47, %s2183_s4  ;;  %v829_v46 = vld [vmem:[%s3201_s8 + $0x2d8] sm:$0xff]  ;;  %v2062_v47 = vpack.c.bf16 %v811_v42, %v810_v40 }
 0x281   :  { %v2064_v50 = vpack.c.bf16 %v829_v46, %v828_v45 }
 0x2e2   :  { %v691_v48 = vpop.permute.xlu1 %690  ;;  %v687_v49 = vpop.permute.xlu0 %686 }
 0x2e3   :  { %v724_v52 = vsel %vm67_vm1, %v687_v49, %v691_v48  ;;  %v2092_v48 = vpack.c.bf16 %v845_v44, %v844_v43  ;;  %vm734_vm1 = vcmask 195584   ;;  %v1513_v44 = vld [vmem:[%s3204_s9] ss:$0 sm:$0xff] }
 0x2e6   :  { %v2873_v53 = vpop.permute.xlu1 %698  ;;  %v695_v54 = vpop.permute.xlu0 %694 }
 0x2e7   :  { %v726_v57 = vsel %vm725_vm10, %v724_v52, %v695_v54  ;;  %v728_v58 = vsel %vm727_vm11, %v695_v54, %v2873_v53  ;;  %v846_v52 = vld [vmem:[%s3201_s8 + $0x360] sm:$0xff]  ;;  %v847_v54 = vld [vmem:[%s3201_s8 + $0x368] sm:$0xff] }
 0x2e8   :  { %1003 = vmatprep.mubr.f32.mxu0 %v728_v58  ;;  %v2095_v58 = vpack.c.bf16 %v847_v54, %v846_v52  ;;  %v1150_v54 = vld [vmem:[%s3205_s10] sm:$0xff] }
 0x2e9   :  { %1004 = vmatmul.mubr.f32.vlgmr.msra.gmra.mrb[16].mxu0 %v726_v57 }
 0x2ea   :  { %2078 = vmatpush1.bf16.msra.mxu0 %v2077_v55  ;;  %v2894_v1 = vpop.permute.xlu1 %702  ;;  %v683_v2 = vpop.permute.xlu0 %682  ;;  %v830_v55 = vld [vmem:[%s3201_s8 + $0x2e0] sm:$0xff] }
 0x2eb   :  { %v721_v6 = vsel %vm244_vm2, %v2860_v30, %v683_v2  ;;  %v723_v7 = vsel %vm722_vm12, %v683_v2, %v687_v49  ;;  %2079 = vmatprep.subr.bf16.mxu0 %v2171_v9  ;;  %v808_v30 = vld [vmem:[%s3201_s8 + $0x230] sm:$0xff]  ;;  %v2068_v60 = vpack.c.bf16 %v831_v56, %v830_v55  ;;  %v730_v19 = vsel %vm729_vm15, %v2873_v53, %v2894_v1  ;;  %v857_v1 = vld [vmem:[%s3201_s8 + $0x3b8] sm:$0xff]  ;;  %v1151_v55 = vld [vmem:[%s3205_s10 + $0x8] sm:$0xff] }
 0x2ec   :  { %933 = vmatprep.mubr.f32.mxu1 %v723_v7  ;;  %v2058_v38 = vpack.c.bf16 %v809_v32, %v808_v30  ;;  %v812_v49 = vld [vmem:[%s3201_s8 + $0x250] sm:$0xff]  ;;  %vm736_vm2 = vcmask 916480  }
 0x2ed   :  { %934 = vmatmul.mubr.f32.vlgmr.msra.gmra.mrb[12].mxu1 %v721_v6  ;;  %v2066_v57 = vpack.c.bf16 %v813_v51, %v812_v49  ;;  %v832_v2 = vld [vmem:[%s3201_s8 + $0x2f0] sm:$0xff] }
 0x2ee   :  { %2047 = vmatpush3.bf16.msra.mxu1 %v2046_v3  ;;  %2081 = vmatpush1.bf16.msra.mxu0 %v2080_v4  ;;  %v2917_v15 = vpop.permute.xlu1 %710  ;;  %v2919_v16 = vpop.permute.xlu0 %706  ;;  %v833_v3 = vld [vmem:[%s3201_s8 + $0x2f8] sm:$0xff]  ;;  %v2070_v4 = vpack.c.bf16 %v815_v61, %v814_v59  ;;  %v816_v6 = vld [vmem:[%s3201_s8 + $0x270] sm:$0xff]  ;;  %v2125_v59 = vpack.c.bf16 %v1151_v55, %v1150_v54 }
 0x2ef   :  { %2049 = vmatprep.subr.bf16.mxu1 %v2048_v8  ;;  %v733_v20 = vsel %vm732_vm13, %v2919_v16, %v2917_v15  ;;  %2082 = vmatprep.subr.bf16.mxu0 %v2171_v9  ;;  %v2072_v7 = vpack.c.bf16 %v833_v3, %v832_v2  ;;  %v817_v8 = vld [vmem:[%s3201_s8 + $0x278] sm:$0xff]  ;;  %v731_v22 = vsel %vm556_vm8, %v730_v19, %v2919_v16  ;;  %v856_v53 = vld [vmem:[%s3201_s8 + $0x3b0] sm:$0xff]  ;;  %v1154_v2 = vld [vmem:[%s3205_s10 + $0x20] sm:$0xff] }
 0x2f0   :  { %1073 = vmatprep.mubr.f32.mxu1 %v733_v20  ;;  %v2074_v12 = vpack.c.bf16 %v817_v8, %v816_v6  ;;  %v854_v20 = vld [vmem:[%s3201_s8 + $0x3a0] sm:$0xff]  ;;  %v2110_v24 = vpack.c.bf16 %v857_v1, %v856_v53  ;;  %v1152_v61 = vld [vmem:[%s3205_s10 + $0x10] sm:$0xff]  ;;  %v1155_v3 = vld [vmem:[%s3205_s10 + $0x28] sm:$0xff] }
 0x2f1   :  { %v2128_v63 = vpack.c.bf16 %v1153_v62, %v1152_v61  ;;  %v1157_v6 = vld [vmem:[%s3205_s10 + $0x38] sm:$0xff]  ;;  %v1326_v19 = vld [vmem:[%s3207_s13 + $0x28] sm:$0xff]  ;;  %v1410_v53 = vld [vmem:[%s3208_s15] sm:$0xff] }
 0x2f2   :  { %2051 = vmatpush3.bf16.msra.mxu1 %v2050_v17  ;;  %2084 = vmatpush1.bf16.msra.mxu0 %v2083_v18  ;;  %v2943_v27 = vpop.permute.xlu1 %718  ;;  %v853_v17 = vld [vmem:[%s3201_s8 + $0x398] sm:$0xff]  ;;  %v715_v16 = vpop.permute.xlu0 %714  ;;  %v1411_v1 = vld [vmem:[%s3208_s15 + $0x8] sm:$0xff] }
 0x2f3   :  { %1514 = vmatprep.mubr.msk.f32.mxu0 %vm866_vm14, %v2943_v27  ;;  %2053 = vmatprep.subr.bf16.mxu1 %v2052_v21  ;;  %v2104_v18 = vpack.c.bf16 %v853_v17, %v852_v14  ;;  %v855_v21 = vld [vmem:[%s3201_s8 + $0x3a8] sm:$0xff]  ;;  %v735_v25 = vsel %vm734_vm1, %v2917_v15, %v715_v16  ;;  %v1158_v15 = vld [vmem:[%s3203_s11] sm:$0xff]  ;;  %v1324_v17 = vld [vmem:[%s3207_s13 + $0x18] sm:$0xff] }
 0x2f4   :  { %2085 = vmatprep.subr.bf16.mxu0 %v2171_v9  ;;  %v2107_v23 = vpack.c.bf16 %v855_v21, %v854_v20  ;;  %v1327_v21 = vld [vmem:[%s3207_s13 + $0x30] sm:$0xff] }
 0x2f6   :  { %2055 = vmatpush3.bf16.msra.mxu1 %v2054_v28  ;;  %2087 = vmatpush1.bf16.msra.mxu0 %v2086_v29  ;;  %v737_v28 = vsel %vm736_vm2, %v735_v25, %v2943_v27  ;;  %v1159_v29 = vld [vmem:[%s3203_s11 + $0x8] sm:$0xff]  ;;  %v1161_v27 = vld [vmem:[%s3203_s11 + $0x18] sm:$0xff] }
 0x2f7   :  { %2057 = vmatprep.subr.bf16.mxu1 %v2056_v31  ;;  %2088 = vmatprep.subr.bf16.mxu0 %v2171_v9  ;;  %v2113_v30 = vpack.c.bf16 %v1159_v29, %v1158_v15  ;;  %v1160_v31 = vld [vmem:[%s3203_s11 + $0x10] sm:$0xff] }
 0x2f8   :  { %v2116_v32 = vpack.c.bf16 %v1161_v27, %v1160_v31  ;;  %v1412_v27 = vld [vmem:[%s3208_s15 + $0x10] sm:$0xff] }
 0x2fa   :  { %2059 = vmatpush3.bf16.msra.mxu1 %v2058_v38  ;;  %2090 = vmatpush1.bf16.msra.mxu0 %v2089_v39  ;;  %v1165_v38 = vld [vmem:[%s3203_s11 + $0x38] sm:$0xff] }
 0x2fb   :  { %2061 = vmatprep.subr.bf16.mxu1 %v2060_v41  ;;  %2091 = vmatprep.subr.bf16.mxu0 %v2171_v9  ;;  %v2122_v39 = vpack.c.bf16 %v1165_v38, %v1164_v36 }
 0x2fe   :  { %2063 = vmatpush3.bf16.msra.mxu1 %v2062_v47  ;;  %2093 = vmatpush1.bf16.msra.mxu0 %v2092_v48 }
 0x2ff   :  { %2065 = vmatprep.subr.bf16.mxu1 %v2064_v50  ;;  %2094 = vmatprep.subr.bf16.mxu0 %v2171_v9 }
 0x302   :  { %2067 = vmatpush3.bf16.msra.mxu1 %v2066_v57  ;;  %2096 = vmatpush1.bf16.msra.mxu0 %v2095_v58 }
 0x303   :  { %2069 = vmatprep.subr.bf16.mxu1 %v2068_v60  ;;  %2097 = vmatprep.subr.bf16.mxu0 %v2171_v9 }
 0x306   :  { %2071 = vmatpush3.bf16.msra.mxu1 %v2070_v4  ;;  %2099 = vmatpush1.bf16.msra.mxu0 %v2098_v5  ;;  %v2131_v4 = vpack.c.bf16 %v1155_v3, %v1154_v2  ;;  %v1156_v5 = vld [vmem:[%s3205_s10 + $0x30] sm:$0xff] }
 0x307   :  { %2073 = vmatprep.subr.bf16.mxu1 %v2072_v7  ;;  %2100 = vmatprep.subr.bf16.mxu0 %v2171_v9  ;;  %v1501_v7 = vld [vmem:[%s3206_s3] ss:$0 sm:$0xff]  ;;  %v2134_v8 = vpack.c.bf16 %v1157_v6, %v1156_v5 }
 0x308   :  { %v138_v10 = vadd.f32 %v1501_v7, %v2637_v37  ;;  %v1323_v37 = vld [vmem:[%s3207_s13 + $0x10] sm:$0xff] }
 0x30a   :  { %2075 = vmatpush3.bf16.msra.mxu1 %v2074_v12  ;;  %2102 = vmatpush1.bf16.msra.mxu0 %v2101_v13  ;;  %v141_v11 = vmax.f32 %v138_v10, 0.0  ;;  %v1321_v12 = vld [vmem:[%s3207_s13] sm:$0xff]  ;;  %v1322_v13 = vld [vmem:[%s3207_s13 + $0x8] sm:$0xff] }
 0x30b   :  { %2103 = vmatprep.subr.bf16.mxu0 %v2171_v9  ;;  %2112 = vmatprep.subr.bf16.mxu1 %v2171_v9  ;;  %v2137_v14 = vpack.c.bf16 %v1322_v13, %v1321_v12 }
 0x30d   :  { %1074 = vmatmul.mubr.f32.vlgmr.msra.gmra.mrb[14].mxu1 %v731_v22  ;;  %v1328_v22 = vld [vmem:[%s3207_s13 + $0x38] sm:$0xff] }
 0x30e   :  { %2105 = vmatpush1.bf16.msra.mxu0 %v2104_v18  ;;  %1813 = vmatprep.mubr.msk.f32.mxu1 %vm2170_vm0, %v2169_v0  ;;  %v2140_v18 = vpack.c.bf16 %v1324_v17, %v1323_v37 }
 0x30f   :  { %2106 = vmatprep.subr.bf16.mxu0 %v2171_v9  ;;  %2114 = vmatpush3.bf16.msra.mxu1 %v2113_v30 }
 0x310   :  { %2115 = vmatprep.subr.bf16.mxu1 %v2171_v9 }
 0x312   :  { %2108 = vmatpush1.bf16.msra.mxu0 %v2107_v23  ;;  %v2146_v23 = vpack.c.bf16 %v1328_v22, %v1327_v21 }
 0x313   :  { %2109 = vmatprep.subr.bf16.mxu0 %v2171_v9  ;;  %2117 = vmatpush3.bf16.msra.mxu1 %v2116_v32 }
 0x314   :  { %2118 = vmatprep.subr.bf16.mxu1 %v2171_v9 }
 0x316   :  { %2111 = vmatpush1.bf16.msra.mxu0 %v2110_v24  ;;  %v2149_v24 = vpack.c.bf16 %v1411_v1, %v1410_v53 }
 0x317   :  { %1127 = vmatprep.subr.mxu0 %v2169_v0  ;;  %2120 = vmatpush3.bf16.msra.mxu1 %v2119_v35 }
 0x318   :  { %2121 = vmatprep.subr.bf16.mxu1 %v2171_v9 }
 0x31a   :  { %1128 = vmatpush1.msra.mxu0 %v858_v26 }
 0x31b   :  { %1144 = vmatmul.mubr.f32.vlgmr.msra.gmra.mrb[18].mxu0 %v737_v28  ;;  %2148 = vmatprep.subr.bf16.mxu0 %v2171_v9  ;;  %v1517_v28 = vld [vmem:[%s3209_s12] ss:$0 sm:$0xff] }
 0x31c   :  { %1862 = vmatprep.mubr.msk.f32.mxu0 %vm2170_vm0, %v2169_v0  ;;  %2123 = vmatpush3.bf16.msra.mxu1 %v2122_v39 }
 0x31d   :  { %2124 = vmatprep.subr.bf16.mxu1 %v2171_v9  ;;  %2150 = vmatpush3.bf16.msra.mxu0 %v2149_v24 }
 0x31e   :  { %2151 = vmatprep.subr.bf16.mxu0 %v2171_v9 }
 0x3bc   :  { %v1694_v40 = vpop.f32.mrb[16].mxu0 }
 0x3bd   :  { %v1695_v41 = vpop.f32.mrb[17].mxu0 }
 0x3be   :  { %v1696_v42 = vadd.f32 %v1695_v41, %v1694_v40  ;;  %v1520_v40 = vld [vmem:[#allocation2] ss:$0 sm:$0xff] }
 0x3c0   :  { %v1659_v43 = vpop.f32.mrb[12].mxu1 }
 0x3c1   :  { %v1660_v45 = vpop.f32.mrb[13].mxu1 }
 0x3c2   :  { %v1661_v46 = vadd.f32 %v1660_v45, %v1659_v43 }
 0x3c4   :  { %v936_v47 = vadd.f32 %v1661_v46, %v1513_v44 }
 0x3c6   :  { %v1006_v48 = vadd.f32 %v1696_v42, %v936_v47 }
 0x3e0   :  { %v1729_v49 = vpop.f32.mrb[14].mxu1 }
 0x3e1   :  { %v1730_v50 = vpop.f32.mrb[15].mxu1 }
 0x3e2   :  { %v1731_v51 = vadd.f32 %v1730_v50, %v1729_v49 }
 0x3e4   :  { %v1076_v52 = vadd.f32 %v1731_v51, %v1006_v48 }
 0x3ee   :  { %v1145_v56 = vpop.f32.mrb[18].mxu0 }
 0x3ef   :  { %v1146_v57 = vadd.f32 %v1145_v56, %v1076_v52  ;;  %v1147_v58 = vpop.f32.mrb[19].mxu0 }
 0x3f1   :  { %v1149_v60 = vmax.f32 %v1146_v57, 0.0 }
 0x3f3   :  { %1814 = vmatmul.mubr.msk.f32.vlgmr.msra.gmra.mrb[16].mxu1 %vm732_vm13, %v1149_v60 }
 0x3f4   :  { %2126 = vmatpush3.bf16.msra.mxu1 %v2125_v59  ;;  %1832 = vmatprep.mubr.msk.f32.mxu1 %vm2170_vm0, %v2169_v0 }
 0x3f5   :  { %2127 = vmatprep.subr.bf16.mxu1 %v2171_v9 }
 0x3f8   :  { %2129 = vmatpush3.bf16.msra.mxu1 %v2128_v63 }
 0x3f9   :  { %2130 = vmatprep.subr.bf16.mxu1 %v2171_v9 }
 0x3fc   :  { %2132 = vmatpush3.bf16.msra.mxu1 %v2131_v4 }
 0x3fd   :  { %2133 = vmatprep.subr.bf16.mxu1 %v2171_v9 }
 0x400   :  { %2135 = vmatpush3.bf16.msra.mxu1 %v2134_v8 }
 0x401   :  { %2136 = vmatprep.subr.bf16.mxu1 %v2171_v9 }
 0x403   :  { %1833 = vmatmul.mubr.msk.f32.vlgmr.msra.gmra.mrb[18].mxu1 %vm732_vm13, %v141_v11 }
 0x404   :  { %1851 = vmatprep.mubr.msk.f32.mxu1 %vm2170_vm0, %v2169_v0  ;;  %2138 = vmatpush3.bf16.msra.mxu1 %v2137_v14  ;;  %v1325_v0 = vld [vmem:[%s3207_s13 + $0x20] sm:$0xff]  ;;  %vm1421_vm0 = vcmask 261120  }
 0x405   :  { %2139 = vmatprep.subr.bf16.mxu1 %v2171_v9  ;;  %v2143_v20 = vpack.c.bf16 %v1326_v19, %v1325_v0 }
 0x408   :  { %2141 = vmatpush3.bf16.msra.mxu1 %v2140_v18 }
 0x409   :  { %2142 = vmatprep.subr.bf16.mxu1 %v2171_v9 }
 0x40c   :  { %2144 = vmatpush3.bf16.msra.mxu1 %v2143_v20 }
 0x40d   :  { %2145 = vmatprep.subr.bf16.mxu1 %v2171_v9  ;;  %v1413_v9 = vld [vmem:[%s3208_s15 + $0x18] sm:$0xff] }
 0x40e   :  { %v2152_v32 = vpack.c.bf16 %v1413_v9, %v1412_v27 }
 0x410   :  { %2147 = vmatpush3.bf16.msra.mxu1 %v2146_v23  ;;  %2153 = vmatpush3.bf16.msra.mxu0 %v2152_v32 }
 0x4c6   :  { %v1235_v16 = vpop.f32.mrb[16].mxu1 }
 0x4c7   :  { %v1815_v25 = vpop.f32.mrb[17].mxu1 }
 0x4d6   :  { %v1308_v26 = vpop.f32.mrb[18].mxu1 }
 0x4d7   :  { %v1309_v15 = vadd.f32 %v1308_v26, %v1235_v16  ;;  %v1834_v29 = vpop.f32.mrb[19].mxu1 }
 0x4d9   :  { %v1319_v30 = vadd.f32 %v1517_v28, %v1309_v15 }
 0x4db   :  { %v1320_v31 = vmax.f32 %v1319_v30, 0.0 }
 0x4dd   :  { %1852 = vmatmul.mubr.msk.f32.vlgmr.msra.gmra.mrb[20].mxu1 %vm732_vm13, %v1320_v31 }
 0x5b0   :  { %v1405_v35 = vpop.f32.mrb[20].mxu1 }
 0x5b1   :  { %v1406_v36 = vadd.f32 %v1518_v34, %v1405_v35  ;;  %v1853_v38 = vpop.f32.mrb[21].mxu1 }
 0x5b3   :  { %v1409_v39 = vmax.f32 %v1406_v36, 0.0 }
 0x5b5   :  { %1863 = vmatmul.mubr.msk.f32.vlgmr.msra.gmra.mrb[20].mxu0 %vm1421_vm0, %v1409_v39 }
 0x688   :  { %v1491_v41 = vpop.f32.mrb[20].mxu0 }
 0x689   :  { %v1492_v42 = vadd.f32 %v1520_v40, %v1491_v41  ;;  %v1864_v43 = vpop.f32.mrb[21].mxu0 }
 0x68b   :  { %1496 = vst.msk [vmem:[%s3212_s17] sm:$0x3] %vm1495_vm3, %v1492_v42 }

</bundles_post_ra>
